<compile_context>
chip_gen: v6e
topology: v6e:2x2x1
jax: 0.10.0
libtpu: 0.0.40
codegen_flags: <defaults>
</compile_context>

<pallas_src>
import functools

import jax
import jax.numpy as jnp
from jax.experimental import pallas as pl
from jax.experimental.pallas import tpu as pltpu


# ---------------------------------------------------------------------------
# Kernel
# ---------------------------------------------------------------------------
def _make_ffn_kernel(split_gate_dot: bool):
    """SwiGLU FFN kernel. Grid = (token tiles [parallel], hidden tiles [arbitrary])."""

    def kernel(x_ref, w13_ref, w2_ref, o_ref, acc_ref):
        h = pl.program_id(1)

        @pl.when(h == 0)
        def _init():
            acc_ref[...] = jnp.zeros_like(acc_ref)

        x = x_ref[...]                                   # (tm, Din)       bf16
        th = w13_ref.shape[-1] // 2

        if split_gate_dot:
            # v7x: two half-width dots + immediate gating -> halves peak live f32.
            h1 = jnp.dot(x, w13_ref[:, :th], preferred_element_type=jnp.float32)
            h3 = jnp.dot(x, w13_ref[:, th:], preferred_element_type=jnp.float32)
        else:
            # v5e/v6e: one wide MXU push over the fused [w1|w3] tile.
            xw = jnp.dot(x, w13_ref[...], preferred_element_type=jnp.float32)
            h1 = xw[:, :th]
            h3 = xw[:, th:]

        # SwiGLU gate in f32; sigmoid runs on the EUP slot (essentially free).
        gated = (h1 * jax.nn.sigmoid(h1)) * h3           # (tm, th) f32

        acc_ref[...] += jnp.dot(gated.astype(w2_ref.dtype), w2_ref[...],
                                preferred_element_type=jnp.float32)

        @pl.when(h == pl.num_programs(1) - 1)
        def _finalize():
            o_ref[...] = acc_ref[...].astype(o_ref.dtype)

    return kernel


# ---------------------------------------------------------------------------
# Generation-aware configuration
# ---------------------------------------------------------------------------
def _chip_profile():
    """Best-effort TPU generation probe. Falls back to conservative defaults."""
    vmem_cap = 128 * 1024 * 1024
    try:
        info = pltpu.get_tpu_info()
        vmem_cap = int(getattr(info, "vmem_capacity_bytes", vmem_cap))
    except Exception:
        pass
    kind = ""
    try:
        kind = jax.devices()[0].device_kind.lower()
    except Exception:
        pass
    small_vmem = vmem_cap <= 72 * 1024 * 1024            # v7x-like: 64 MiB / TC
    is_v5 = ("v5" in kind) and not small_vmem
    return {"vmem_cap": vmem_cap, "small_vmem": small_vmem, "is_v5": is_v5}


def _largest_divisor_tile(total, target, align):
    """Largest multiple of `align` <= target that divides `total`; fallback = total."""
    if total <= align:
        return total
    t = min(target, (total // align) * align)
    t = max((t // align) * align, align)
    while t >= align:
        if total % t == 0:
            return t
        t -= align
    return total


def choose_hidden_tile(H, profile=None):
    profile = profile or _chip_profile()
    # v7x: th=256 halves w13/w2 double-buffers (still matches 2x256x256 MXU);
    # v5e/v6e: th=512 keeps per-step weight DMAs large.
    th_target = 256 if profile["small_vmem"] else 512
    return _largest_divisor_tile(H, th_target, 128)


def _choose_token_tile(T, sublane, profile):
    if profile["small_vmem"]:
        tm_target = 512
        # 2 TensorCores on v7x: keep the number of token tiles even so the
        # "parallel" axis shards evenly across cores.
        if T % 2 == 0 and (T // 2) >= sublane:
            return _largest_divisor_tile(T // 2, tm_target, sublane)
        return _largest_divisor_tile(T, tm_target, sublane)
    tm_target = 256 if profile["is_v5"] else 512
    return _largest_divisor_tile(T, tm_target, sublane)


# ---------------------------------------------------------------------------
# One-time parameter preparation (mirrors the module's mlp_layer_fusion concat,
# but done ONCE, outside the per-call forward path).
# ---------------------------------------------------------------------------
def prefuse_w13(w1, w3, th=None):
    """w1, w3: [Din, H] -> [H//th, Din, 2*th]; each H-tile is a contiguous HBM slab."""
    Din, H = w1.shape
    if th is None:
        th = choose_hidden_tile(H)
    assert H % th == 0, "hidden dim must divide by hidden tile"
    nh = H // th
    w1t = w1.reshape(Din, nh, th)
    w3t = w3.reshape(Din, nh, th)
    w13 = jnp.concatenate([w1t, w3t], axis=-1)           # (Din, nh, 2*th)
    return jnp.transpose(w13, (1, 0, 2))                 # (nh, Din, 2*th)


# ---------------------------------------------------------------------------
# Forward wrapper
# ---------------------------------------------------------------------------
def feedforward(x, w13_tiled, w2, *, tm=None):
    """x: [..., Din]; w13_tiled: [H//th, Din, 2*th] (from prefuse_w13); w2: [H, Dout]."""
    profile = _chip_profile()

    lead_shape = x.shape[:-1]
    Din = x.shape[-1]
    nh, Din_w, two_th = w13_tiled.shape
    th = two_th // 2
    H, Dout = w2.shape
    assert Din_w == Din and nh * th == H

    x2 = x.reshape(-1, Din)
    T = x2.shape[0]

    itemsize = jnp.dtype(x.dtype).itemsize
    sublane = 8 if itemsize == 4 else 16
    if tm is None:
        tm = _choose_token_tile(T, sublane, profile)

    assert T % tm == 0, "token count must divide by token tile"
    # TODO(synk): pad/mask ragged token counts instead of hard-failing for production shapes.
    assert tm % sublane == 0 or tm == T, "token tile must be sublane-aligned"
    assert Din % 128 == 0 and Dout % 128 == 0 and th % 128 == 0, \
        "Din/Dout/th must be lane (128) aligned"

    split_gate_dot = profile["small_vmem"]               # v7x: halve live f32 intermediate
    kernel = _make_ffn_kernel(split_gate_dot)

    grid = (T // tm, nh)                                  # token tiles (parallel), H tiles (reduce)

    # VMEM budget: double-buffered tiles + f32 accumulator + in-kernel f32
    # intermediates (xw/h1,h3 and gated + its bf16 copy) + headroom, capped by the
    # generation's physical capacity.
    est = (2 * itemsize * (tm * Din)                      # x tile (x2 buffers)
           + 2 * itemsize * (Din * 2 * th)                # w13 tile (x2 buffers)
           + 2 * itemsize * (th * Dout)                   # w2 tile (x2 buffers)
           + 2 * itemsize * (tm * Dout)                   # output tile (x2 buffers)
           + 4 * tm * Dout                                # f32 accumulator
           + 4 * tm * 2 * th                              # f32 xw / h1,h3
           + 4 * tm * th + itemsize * tm * th)            # gated f32 + bf16 copy
    cap = int(0.8 * profile["vmem_cap"])                  # ~51 MiB on v7x, ~102 MiB on v5e/v6e
    vmem_limit = int(min(max(int(1.5 * est) + (8 << 20), 32 << 20), cap))

    out2 = pl.pallas_call(
        kernel,
        out_shape=jax.ShapeDtypeStruct((T, Dout), x.dtype),
        grid_spec=pltpu.PrefetchScalarGridSpec(
            num_scalar_prefetch=0,
            grid=grid,
            in_specs=[
                pl.BlockSpec((tm, Din), lambda i, h: (i, 0)),                 # x tile (const over h)
                pl.BlockSpec((pl.Squeezed(), Din, 2 * th),
                             lambda i, h: (h, 0, 0)),                         # contiguous [w1|w3] slab
                pl.BlockSpec((th, Dout), lambda i, h: (h, 0)),                # w2 tile
            ],
            out_specs=pl.BlockSpec((tm, Dout), lambda i, h: (i, 0)),          # resident over h
            scratch_shapes=[pltpu.VMEM((tm, Dout), jnp.float32)],
        ),
        compiler_params=pltpu.CompilerParams(
            dimension_semantics=("parallel", "arbitrary"),
            vmem_limit_bytes=vmem_limit,
        ),
    )(x2, w13_tiled, w2)

    return out2.reshape(*lead_shape, Dout)


# ---------------------------------------------------------------------------
# Pure-JAX reference (mirrors the in-kernel bf16 cast of the gated activation)
# ---------------------------------------------------------------------------
def reference_feedforward(x, w1, w3, w2, gate_dtype=None):
    xf = x.astype(jnp.float32)
    h1 = xf @ w1.astype(jnp.float32)
    h3 = xf @ w3.astype(jnp.float32)
    gated = jax.nn.silu(h1) * h3
    if gate_dtype is not None:
        gated = gated.astype(gate_dtype).astype(jnp.float32)
    return gated @ w2.astype(jnp.float32)


if __name__ == "__main__":
    # Module config: bias=False, activation_type="swiglu"; multiple_of rounding reproduced;
    # mlp_layer_fusion's weight concat mirrored by the one-time prefuse_w13() below.
    in_features = 128
    hidden_features_req = 200
    multiple_of = 256
    hidden_features = multiple_of * ((hidden_features_req + multiple_of - 1) // multiple_of)  # 256
    out_features = 128
    batch, seq = 2, 128   # 256 tokens total

    key = jax.random.PRNGKey(0)
    kx, k1, k3, k2 = jax.random.split(key, 4)

    dtype = jnp.bfloat16  # bf16 operands, f32 accumulation inside the kernel
    x = jax.random.normal(kx, (batch, seq, in_features), jnp.float32).astype(dtype)
    w1 = (jax.random.normal(k1, (in_features, hidden_features), jnp.float32) * 0.02).astype(dtype)
    w3 = (jax.random.normal(k3, (in_features, hidden_features), jnp.float32) * 0.02).astype(dtype)
    w2 = (jax.random.normal(k2, (hidden_features, out_features), jnp.float32) * 0.02).astype(dtype)

    # One-time parameter prep (NOT in the forward path).
    th = choose_hidden_tile(hidden_features)
    w13_tiled = jax.block_until_ready(prefuse_w13(w1, w3, th=th))

    out = feedforward(x, w13_tiled, w2)
    out = jax.block_until_ready(out)

    ref = reference_feedforward(
        x.reshape(-1, in_features), w1, w3, w2, gate_dtype=dtype
    ).reshape(batch, seq, out_features)

    assert out.shape == (batch, seq, out_features)
    err = float(jnp.max(jnp.abs(out.astype(jnp.float32) - ref)))
    assert jnp.allclose(out.astype(jnp.float32), ref, atol=2e-3, rtol=5e-2), \
        f"mismatch vs reference (max abs err {err})"

    print("KERNEL_OK")
</pallas_src>

<mosaic_0001>
module attributes {stable_mosaic.version = 11 : i64} {
  func.func @kernel(%arg0: i32, %arg1: i32, %arg2: memref<256x128xbf16, #tpu.memory_space<vmem>>, %arg3: memref<1x128x512xbf16, #tpu.memory_space<vmem>>, %arg4: memref<256x128xbf16, #tpu.memory_space<vmem>>, %arg5: memref<256x128xbf16, #tpu.memory_space<vmem>>, %arg6: memref<256x128xf32, #tpu.memory_space<vmem>>) attributes {dimension_semantics = [#tpu.dimension_semantics<parallel>, #tpu.dimension_semantics<arbitrary>], iteration_bounds = array<i64: 1, 1>, scalar_prefetch = 0 : i64, scratch_operands = 1 : i64, tpu.core_type = #tpu.core_type<tc>, window_params = [{transform_indices = @transform_0, window_bounds = array<i64: 256, 128>}, {transform_indices = @transform_1, window_bounds = array<i64: 1, 128, 512>}, {transform_indices = @transform_2, window_bounds = array<i64: 256, 128>}, {transform_indices = @transform_3, window_bounds = array<i64: 256, 128>}]} {
    %c0_i32 = arith.constant 0 : i32
    %0 = arith.cmpi eq, %arg1, %c0_i32 : i32
    %1 = arith.extui %0 : i1 to i32
    %c0_i32_0 = arith.constant 0 : i32
    %2 = arith.cmpi ne, %1, %c0_i32_0 : i32
    scf.if %2 {
      %cst_15 = arith.constant 0.000000e+00 : f32
      %25 = vector.broadcast %cst_15 : f32 to vector<256x128xf32>
      %c0_16 = arith.constant 0 : index
      %c0_17 = arith.constant 0 : index
      %26 = vector.load %arg6[%c0_16, %c0_17] : memref<256x128xf32, #tpu.memory_space<vmem>>, vector<256x128xf32>
      tpu.vector_store %arg6[%c0_16, %c0_17], %25 {strides = array<i32>} : memref<256x128xf32, #tpu.memory_space<vmem>>, vector<256x128xf32>,
    } else {
    }
    %c0 = arith.constant 0 : index
    %c0_1 = arith.constant 0 : index
    %3 = vector.load %arg2[%c0, %c0_1] : memref<256x128xbf16, #tpu.memory_space<vmem>>, vector<256x128xbf16>
    %c0_2 = arith.constant 0 : index
    %c0_3 = arith.constant 0 : index
    %c0_4 = arith.constant 0 : index
    %4 = vector.load %arg3[%c0_2, %c0_3, %c0_4] : memref<1x128x512xbf16, #tpu.memory_space<vmem>>, vector<1x128x512xbf16>
    %5 = vector.shape_cast %4 : vector<1x128x512xbf16> to vector<128x512xbf16>
    %cst = arith.constant dense<0.000000e+00> : vector<256x512xf32>
    %6 = tpu.matmul %3, %5, %cst {dimension_numbers = #tpu.dot_dimension_numbers<[1], [0], [0], [1], [0, 0, 1, 1], [], []>} : vector<256x128xbf16>, vector<128x512xbf16>, vector<256x512xf32> -> vector<256x512xf32>
    %7 = vector.extract_strided_slice %6 {offsets = [0, 0], sizes = [256, 256], strides = [1, 1]} : vector<256x512xf32> to vector<256x256xf32>
    %8 = vector.extract_strided_slice %6 {offsets = [0, 256], sizes = [256, 256], strides = [1, 1]} : vector<256x512xf32> to vector<256x256xf32>
    %9 = arith.negf %7 : vector<256x256xf32>
    %10 = math.exp %9 : vector<256x256xf32>
    %cst_5 = arith.constant 1.000000e+00 : f32
    %11 = vector.broadcast %cst_5 : f32 to vector<256x256xf32>
    %12 = arith.addf %11, %10 : vector<256x256xf32>
    %13 = arith.divf %11, %12 : vector<256x256xf32>
    %14 = arith.mulf %7, %13 : vector<256x256xf32>
    %15 = arith.mulf %14, %8 : vector<256x256xf32>
    %c0_6 = arith.constant 0 : index
    %c0_7 = arith.constant 0 : index
    %16 = vector.load %arg6[%c0_6, %c0_7] : memref<256x128xf32, #tpu.memory_space<vmem>>, vector<256x128xf32>
    %17 = arith.truncf %15 : vector<256x256xf32> to vector<256x256xbf16>
    %c0_8 = arith.constant 0 : index
    %c0_9 = arith.constant 0 : index
    %18 = vector.load %arg4[%c0_8, %c0_9] : memref<256x128xbf16, #tpu.memory_space<vmem>>, vector<256x128xbf16>
    %cst_10 = arith.constant dense<0.000000e+00> : vector<256x128xf32>
    %19 = tpu.matmul %17, %18, %cst_10 {dimension_numbers = #tpu.dot_dimension_numbers<[1], [0], [0], [1], [0, 0, 1, 1], [], []>} : vector<256x256xbf16>, vector<256x128xbf16>, vector<256x128xf32> -> vector<256x128xf32>
    %20 = arith.addf %16, %19 : vector<256x128xf32>
    %c0_11 = arith.constant 0 : index
    %c0_12 = arith.constant 0 : index
    %21 = vector.load %arg6[%c0_11, %c0_12] : memref<256x128xf32, #tpu.memory_space<vmem>>, vector<256x128xf32>
    tpu.vector_store %arg6[%c0_11, %c0_12], %20 {strides = array<i32>} : memref<256x128xf32, #tpu.memory_space<vmem>>, vector<256x128xf32>,
    %c0_i32_13 = arith.constant 0 : i32
    %22 = arith.cmpi eq, %arg1, %c0_i32_13 : i32
    %23 = arith.extui %22 : i1 to i32
    %c0_i32_14 = arith.constant 0 : i32
    %24 = arith.cmpi ne, %23, %c0_i32_14 : i32
    scf.if %24 {
      %c0_15 = arith.constant 0 : index
      %c0_16 = arith.constant 0 : index
      %25 = vector.load %arg6[%c0_15, %c0_16] : memref<256x128xf32, #tpu.memory_space<vmem>>, vector<256x128xf32>
      %26 = arith.truncf %25 : vector<256x128xf32> to vector<256x128xbf16>
      %c0_17 = arith.constant 0 : index
      %c0_18 = arith.constant 0 : index
      %27 = vector.load %arg5[%c0_17, %c0_18] : memref<256x128xbf16, #tpu.memory_space<vmem>>, vector<256x128xbf16>
      tpu.vector_store %arg5[%c0_17, %c0_18], %26 {strides = array<i32>} : memref<256x128xbf16, #tpu.memory_space<vmem>>, vector<256x128xbf16>,
    } else {
    }
    return
  }
  func.func @transform_0(%arg0: i32, %arg1: i32) -> (i32, i32) {
    %c0_i32 = arith.constant 0 : i32
    %c0_i32_0 = arith.constant 0 : i32
    return %arg0, %c0_i32 : i32, i32
  }
  func.func @transform_1(%arg0: i32, %arg1: i32) -> (i32, i32, i32) {
    %c0_i32 = arith.constant 0 : i32
    %c0_i32_0 = arith.constant 0 : i32
    %c0_i32_1 = arith.constant 0 : i32
    return %arg1, %c0_i32, %c0_i32_0 : i32, i32, i32
  }
  func.func @transform_2(%arg0: i32, %arg1: i32) -> (i32, i32) {
    %c0_i32 = arith.constant 0 : i32
    %c0_i32_0 = arith.constant 0 : i32
    return %arg1, %c0_i32 : i32, i32
  }
  func.func @transform_3(%arg0: i32, %arg1: i32) -> (i32, i32) {
    %c0_i32 = arith.constant 0 : i32
    %c0_i32_0 = arith.constant 0 : i32
    return %arg0, %c0_i32 : i32, i32
  }
}

</mosaic_0001>

<bundles_post_ra>
// kernel: tpu_custom_call.1
= control target key start
LH: loop header
LB: loop body
LE: loop exit
PB: predicated region body
PF: predicated region fallthrough
CT: control target
= control target key end

     0   :  { %8 = vsyncpa [#allocation4], 0  ;;  %s3273_s0 = inlined_call_operand.hbm [shape: bf16[256,128], index: 0, kind: input, shape index: {}]   ;;  %s3274_s1 = inlined_call_operand.hbm [shape: bf16[1,128,512], index: 1, kind: input, shape index: {}]   ;;  %s3275_s2 = inlined_call_operand.hbm [shape: bf16[256,128], index: 2, kind: input, shape index: {}]   ;;  %s3276_s3 = inlined_call_operand.hbm [shape: bf16[256,128], index: 3, kind: output, shape index: {}]  }
   0x1   :  { %9 = vsyncpa [#allocation7], 0 }
   0x2   :  { %10 = vsyncpa [#allocation5], 0  ;;  %s2787_s12 = smov [#allocation6]  }
   0x3   :  { %s28_s13 = sshll.u32 %s2787_s12, 4  ;;  %s29_s13 = int_to_ptr.vmem [resolvable:$true] %s28_s13 }
   0x4   :  { %s2709_s14 = scalar_lea.vmem %s29_s13, 4096  ;;  %p2714_p1 = scmp.lt.s32.totalorder %s29_s13, %s29_s13 }
   0x5   :  { %p2710_p0 = scmp.ne.s32.totalorder %s29_s13, %s2709_s14  ;;  %p2715_p2 = scmp.lt.s32.totalorder %s2709_s14, %s2709_s14 }
   0x7   :  { %p2716_p3 = por %p2715_p2, %p2714_p1 }
   0x9   :  { %p2717_p4 = pnand %p2716_p3, %p2710_p0 }
   0xb   :  { %2720 = shalt.err (!%p2717_p4)
}
   0xc   :  { %s2788_s15 = smov 256   ;;  %s2789_s16 = smov 16  }
   0xd   :  { %34 = dma.hbm_to_vmem [thread:$0]  %s3274_s1, 4096, %s29_s13, [#allocation7], %s2788_s15, %s2788_s15, %s2789_s16  }
   0xe   :  { %s2790_s19 = smov [#allocation3]  }
   0xf   :  { %s16_s20 = sshll.u32 %s2790_s19, 4  ;;  %s17_s20 = int_to_ptr.vmem [resolvable:$true] %s16_s20 }
  0x10   :  { %s2729_s21 = scalar_lea.vmem %s17_s20, 2048  ;;  %p2734_p6 = scmp.lt.s32.totalorder %s17_s20, %s17_s20 }
  0x11   :  { %p2730_p5 = scmp.ne.s32.totalorder %s17_s20, %s2729_s21  ;;  %p2735_p7 = scmp.lt.s32.totalorder %s2729_s21, %s2729_s21 }
  0x13   :  { %p2736_p8 = por %p2735_p7, %p2734_p6 }
  0x15   :  { %p2737_p9 = pnand %p2736_p8, %p2730_p5 }
  0x17   :  { %2740 = shalt.err (!%p2737_p9)
}
  0x18   :  { %s2791_s22 = smov 64   ;;  %s2792_s23 = smov 4  }
  0x19   :  { %22 = dma.hbm_to_vmem [thread:$0]  %s3273_s0, 2048, %s17_s20, [#allocation4], %s2791_s22, %s2791_s22, %s2792_s23  }
  0x1a   :  { %s2793_s1 = smov [#allocation8]  }
  0x1b   :  { %s40_s26 = sshll.u32 %s2793_s1, 4  ;;  %s41_s26 = int_to_ptr.vmem [resolvable:$true] %s40_s26 }
  0x1c   :  { %s2749_s27 = scalar_lea.vmem %s41_s26, 2048  ;;  %p2754_p11 = scmp.lt.s32.totalorder %s41_s26, %s41_s26 }
  0x1d   :  { %p2750_p10 = scmp.ne.s32.totalorder %s41_s26, %s2749_s27  ;;  %p2755_p12 = scmp.lt.s32.totalorder %s2749_s27, %s2749_s27 }
  0x1f   :  { %p2756_p13 = por %p2755_p12, %p2754_p11 }
  0x21   :  { %p2757_p0 = pnand %p2756_p13, %p2750_p10 }
  0x23   :  { %2760 = shalt.err (!%p2757_p0)
}
  0x24   :  { %46 = dma.hbm_to_vmem [thread:$0]  %s3275_s2, 2048, %s41_s26, [#allocation7], %s2791_s22, %s2791_s22, %s2792_s23  }
  0x25   :  { %2781 = dma.done.wait [#allocation4], 2048  }
  0x26   :  { %2782 = vsyncadd [#allocation4], 4294965248 }
  0x27   :  { %2783 = dma.done.wait [#allocation7], 6144  }
  0x28   :  { %2784 = vsyncadd [#allocation7], 4294961152  ;;  %v2794_v0 = vmov 0   ;;  %v2365_v1 = vld [vmem:[#allocation6 + $0xe4] ss:$16 sps:$4 sm:$0xff]   ;;  %v2841_v23 = vld [vmem:[#allocation3 + $0x8] sm:$0xff]  }
  0x29   :  { %445 = vmatprep.mubr.bf16.mxu0 %v2794_v0  ;;  %525 = vmatprep.mubr.bf16.mxu1 %v2794_v0  ;;  %v2367_v2 = vld [vmem:[#allocation6 + $0xe0] ss:$16 sps:$4 sm:$0xff]   ;;  %v2368_v3 = vld [vmem:[#allocation6 + $0xc4] ss:$16 sps:$4 sm:$0xff]   ;;  %v2393_v17 = vld [vmem:[#allocation6 + $0xec] ss:$16 sps:$4 sm:$0xff]  }
  0x2a   :  { %413 = vmatprep.subr.bf16.mxu0 %v2365_v1  ;;  %2340 = vmatprep.subr.bf16.mxu1 %v2365_v1  ;;  %v2370_v4 = vld [vmem:[#allocation6 + $0xc0] ss:$16 sps:$4 sm:$0xff]   ;;  %v2371_v5 = vld [vmem:[#allocation6 + $0xa4] ss:$16 sps:$4 sm:$0xff]   ;;  %v2391_v20 = vld [vmem:[#allocation6 + $0xe8] ss:$16 sps:$4 sm:$0xff]  }
  0x2b   :  { %414 = vmatpush1.bf16.msra.mxu0 %v2367_v2  ;;  %2348 = vmatpush1.bf16.msra.mxu1 %v2367_v2  ;;  %v2373_v6 = vld [vmem:[#allocation6 + $0xa0] ss:$16 sps:$4 sm:$0xff]   ;;  %v2374_v7 = vld [vmem:[#allocation6 + $0x84] ss:$16 sps:$4 sm:$0xff]   ;;  %v2398_v21 = vld [vmem:[#allocation6 + $0xcc] ss:$16 sps:$4 sm:$0xff]  }
  0x2c   :  { %415 = vmatprep.subr.bf16.mxu0 %v2368_v3  ;;  %2341 = vmatprep.subr.bf16.mxu1 %v2368_v3  ;;  %v2376_v8 = vld [vmem:[#allocation6 + $0x80] ss:$16 sps:$4 sm:$0xff]   ;;  %v2377_v9 = vld [vmem:[#allocation6 + $0x64] ss:$16 sps:$4 sm:$0xff]   ;;  %v2396_v22 = vld [vmem:[#allocation6 + $0xc8] ss:$16 sps:$4 sm:$0xff]  }
  0x2d   :  { %v2379_v10 = vld [vmem:[#allocation6 + $0x60] ss:$16 sps:$4 sm:$0xff]   ;;  %v2380_v11 = vld [vmem:[#allocation6 + $0x44] ss:$16 sps:$4 sm:$0xff]   ;;  %v2403_v24 = vld [vmem:[#allocation6 + $0xac] ss:$16 sps:$4 sm:$0xff]  }
  0x2e   :  { %v2382_v12 = vld [vmem:[#allocation6 + $0x40] ss:$16 sps:$4 sm:$0xff]   ;;  %v2383_v13 = vld [vmem:[#allocation6 + $0x24] ss:$16 sps:$4 sm:$0xff]   ;;  %v2843_v25 = vld [vmem:[#allocation3 + $0x48] sm:$0xff]   ;;  %s2795_s0 = smov [#allocation9]  }
  0x2f   :  { %416 = vmatpush1.bf16.msra.mxu0 %v2370_v4  ;;  %2349 = vmatpush1.bf16.msra.mxu1 %v2370_v4  ;;  %v2385_v14 = vld [vmem:[#allocation6 + $0x20] ss:$16 sps:$4 sm:$0xff]   ;;  %v2386_v15 = vld [vmem:[#allocation6 + $0x4] ss:$16 sps:$4 sm:$0xff]   ;;  %v2401_v26 = vld [vmem:[#allocation6 + $0xa8] ss:$16 sps:$4 sm:$0xff]  }
  0x30   :  { %417 = vmatprep.subr.bf16.mxu0 %v2371_v5  ;;  %2342 = vmatprep.subr.bf16.mxu1 %v2371_v5  ;;  %v2388_v16 = vld [vmem:[#allocation6] ss:$16 sps:$4 sm:$0xff]   ;;  %v2408_v27 = vld [vmem:[#allocation6 + $0x8c] ss:$16 sps:$4 sm:$0xff]   ;;  %v2406_v28 = vld [vmem:[#allocation6 + $0x88] ss:$16 sps:$4 sm:$0xff]  }
  0x31   :  { %v2833_v18 = vld [vmem:[#allocation3] sm:$0xff]   ;;  %v2413_v29 = vld [vmem:[#allocation6 + $0x6c] ss:$16 sps:$4 sm:$0xff]   ;;  %v2399_v30 = vld [vmem:[#allocation3 + $0x10] sm:$0xff]   ;;  %s1928_s2 = sshll.u32 %s2795_s0, 4  ;;  %s1929_s2 = int_to_ptr.vmem [resolvable:$true] %s1928_s2 }
  0x32   :  { %v2835_v19 = vld [vmem:[#allocation3 + $0x40] sm:$0xff]   ;;  %v2849_v31 = vld [vmem:[#allocation3 + $0x50] sm:$0xff]   ;;  %v2411_v32 = vld [vmem:[#allocation6 + $0x68] ss:$16 sps:$4 sm:$0xff]   ;;  %s2761_s30 = scalar_lea.vmem %s1929_s2, 2048  ;;  %p2766_p2 = scmp.lt.s32.totalorder %s1929_s2, %s1929_s2 }
  0x33   :  { %418 = vmatpush1.bf16.msra.mxu0 %v2373_v6  ;;  %2350 = vmatpush1.bf16.msra.mxu1 %v2373_v6  ;;  %v2418_v33 = vld [vmem:[#allocation6 + $0x4c] ss:$16 sps:$4 sm:$0xff]   ;;  %v2416_v34 = vld [vmem:[#allocation6 + $0x48] ss:$16 sps:$4 sm:$0xff]   ;;  %v2409_v41 = vld [vmem:[#allocation3 + $0x20] sm:$0xff]   ;;  %p2762_p1 = scmp.ne.s32.totalorder %s1929_s2, %s2761_s30  ;;  %p2767_p3 = scmp.lt.s32.totalorder %s2761_s30, %s2761_s30 }
  0x34   :  { %419 = vmatprep.subr.bf16.mxu0 %v2374_v7  ;;  %2343 = vmatprep.subr.bf16.mxu1 %v2374_v7  ;;  %v2423_v35 = vld [vmem:[#allocation6 + $0x2c] ss:$16 sps:$4 sm:$0xff]   ;;  %v2421_v38 = vld [vmem:[#allocation6 + $0x28] ss:$16 sps:$4 sm:$0xff]   ;;  %v2859_v42 = vld [vmem:[#allocation3 + $0x60] sm:$0xff]  }
  0x35   :  { %v2404_v36 = vld [vmem:[#allocation3 + $0x18] sm:$0xff]   ;;  %v2414_v43 = vld [vmem:[#allocation3 + $0x28] sm:$0xff]   ;;  %v2419_v45 = vld [vmem:[#allocation3 + $0x30] sm:$0xff]   ;;  %p2768_p4 = por %p2767_p3, %p2766_p2 }
  0x36   :  { %v2854_v37 = vld [vmem:[#allocation3 + $0x58] sm:$0xff]   ;;  %v2415_v44 = vld [vmem:[#allocation3 + $0x68] sm:$0xff]   ;;  %v2420_v46 = vld [vmem:[#allocation3 + $0x70] sm:$0xff]  }
  0x37   :  { %420 = vmatpush1.bf16.msra.mxu0 %v2376_v8  ;;  %2351 = vmatpush1.bf16.msra.mxu1 %v2376_v8  ;;  %v2428_v39 = vld [vmem:[#allocation6 + $0xc] ss:$16 sps:$4 sm:$0xff]   ;;  %v2426_v40 = vld [vmem:[#allocation6 + $0x8] ss:$16 sps:$4 sm:$0xff]   ;;  %v2431_v51 = vld [vmem:[#allocation8 + $0x70] sm:$0xff]   ;;  %p2769_p5 = pnand %p2768_p4, %p2762_p1 }
  0x38   :  { %421 = vmatprep.subr.bf16.mxu0 %v2377_v9  ;;  %2344 = vmatprep.subr.bf16.mxu1 %v2377_v9  ;;  %v2424_v47 = vld [vmem:[#allocation3 + $0x38] sm:$0xff]   ;;  %v2432_v52 = vld [vmem:[#allocation8 + $0x30] sm:$0xff]   ;;  %v2433_v53 = vld [vmem:[#allocation8 + $0x68] sm:$0xff]  }
  0x39   :  { %v2425_v48 = vld [vmem:[#allocation3 + $0x78] sm:$0xff]   ;;  %v2434_v54 = vld [vmem:[#allocation8 + $0x28] sm:$0xff]   ;;  %v2435_v55 = vld [vmem:[#allocation8 + $0x60] sm:$0xff]  }
  0x3a   :  { %v2429_v49 = vld [vmem:[#allocation8 + $0x78] sm:$0xff]   ;;  %v2436_v56 = vld [vmem:[#allocation8 + $0x20] sm:$0xff]   ;;  %v2439_v59 = vld [vmem:[#allocation8 + $0x50] sm:$0xff]  }
  0x3b   :  { %422 = vmatpush1.bf16.msra.mxu0 %v2379_v10  ;;  %2352 = vmatpush1.bf16.msra.mxu1 %v2379_v10  ;;  %v2430_v50 = vld [vmem:[#allocation8 + $0x38] sm:$0xff]   ;;  %v2440_v60 = vld [vmem:[#allocation8 + $0x10] sm:$0xff]   ;;  %v2441_v61 = vld [vmem:[#allocation8 + $0x48] sm:$0xff]  }
  0x3c   :  { %423 = vmatprep.subr.bf16.mxu0 %v2380_v11  ;;  %2345 = vmatprep.subr.bf16.mxu1 %v2380_v11  ;;  %v2437_v57 = vld [vmem:[#allocation8 + $0x58] sm:$0xff]   ;;  %v2442_v62 = vld [vmem:[#allocation8 + $0x8] sm:$0xff]   ;;  %v2443_v63 = vld [vmem:[#allocation8 + $0x40] sm:$0xff]  }
  0x3d   :  { %v2438_v58 = vld [vmem:[#allocation8 + $0x18] sm:$0xff]   ;;  %v2444_v1 = vld [vmem:[#allocation8] sm:$0xff]  }
  0x3f   :  { %424 = vmatpush1.bf16.msra.mxu0 %v2382_v12  ;;  %2353 = vmatpush1.bf16.msra.mxu1 %v2382_v12 }
  0x40   :  { %425 = vmatprep.subr.bf16.mxu0 %v2383_v13  ;;  %2346 = vmatprep.subr.bf16.mxu1 %v2383_v13 }
  0x43   :  { %426 = vmatpush1.bf16.msra.mxu0 %v2385_v14  ;;  %2354 = vmatpush1.bf16.msra.mxu1 %v2385_v14 }
  0x44   :  { %427 = vmatprep.subr.bf16.mxu0 %v2386_v15  ;;  %2347 = vmatprep.subr.bf16.mxu1 %v2386_v15 }
  0x47   :  { %428 = vmatpush1.bf16.msra.mxu0 %v2388_v16  ;;  %2355 = vmatpush1.bf16.msra.mxu1 %v2388_v16 }
  0x48   :  { %606 = vmatprep.subr.bf16.mxu1 %v2393_v17  ;;  %2228 = vmatprep.subr.bf16.mxu0 %v2429_v49 }
  0x4a   :  { %446 = vmatmul.mubr.bf16.vlgmr.msra.gmra.mxu0 %v2833_v18  ;;  %526 = vmatmul.mubr.bf16.vlgmr.msra.gmra.mxu1 %v2835_v19 }
  0x4b   :  { %607 = vmatpush1.bf16.msra.mxu1 %v2391_v20  ;;  %455 = vmatprep.mubr.bf16.mxu0 %v2794_v0 }
  0x4c   :  { %535 = vmatprep.mubr.bf16.mxu1 %v2794_v0  ;;  %608 = vmatprep.subr.bf16.mxu1 %v2398_v21 }
  0x4d   :  { %2229 = vmatpush3.bf16.msra.mxu0 %v2430_v50 }
  0x4e   :  { %2230 = vmatprep.subr.bf16.mxu0 %v2431_v51 }
  0x4f   :  { %609 = vmatpush1.bf16.msra.mxu1 %v2396_v22 }
  0x50   :  { %610 = vmatprep.subr.bf16.mxu1 %v2403_v24 }
  0x51   :  { %2231 = vmatpush3.bf16.msra.mxu0 %v2432_v52 }
  0x52   :  { %456 = vmatmul.mubr.bf16.gmra.mxu0 %v2841_v23  ;;  %536 = vmatmul.mubr.bf16.gmra.mxu1 %v2843_v25 }
  0x53   :  { %465 = vmatprep.mubr.bf16.mxu0 %v2794_v0  ;;  %545 = vmatprep.mubr.bf16.mxu1 %v2794_v0 }
  0x54   :  { %611 = vmatpush1.bf16.msra.mxu1 %v2401_v26  ;;  %2232 = vmatprep.subr.bf16.mxu0 %v2433_v53 }
  0x55   :  { %612 = vmatprep.subr.bf16.mxu1 %v2408_v27  ;;  %2233 = vmatpush3.bf16.msra.mxu0 %v2434_v54 }
  0x56   :  { %2234 = vmatprep.subr.bf16.mxu0 %v2435_v55 }
  0x58   :  { %613 = vmatpush1.bf16.msra.mxu1 %v2406_v28 }
  0x59   :  { %614 = vmatprep.subr.bf16.mxu1 %v2413_v29  ;;  %2235 = vmatpush3.bf16.msra.mxu0 %v2436_v56 }
  0x5a   :  { %466 = vmatmul.mubr.bf16.gmra.mxu0 %v2399_v30  ;;  %546 = vmatmul.mubr.bf16.gmra.mxu1 %v2849_v31 }
  0x5b   :  { %475 = vmatprep.mubr.bf16.mxu0 %v2794_v0  ;;  %555 = vmatprep.mubr.bf16.mxu1 %v2794_v0 }
  0x5c   :  { %615 = vmatpush1.bf16.msra.mxu1 %v2411_v32  ;;  %2236 = vmatprep.subr.bf16.mxu0 %v2437_v57 }
  0x5d   :  { %616 = vmatprep.subr.bf16.mxu1 %v2418_v33  ;;  %2237 = vmatpush3.bf16.msra.mxu0 %v2438_v58 }
  0x5e   :  { %2238 = vmatprep.subr.bf16.mxu0 %v2439_v59 }
  0x60   :  { %617 = vmatpush1.bf16.msra.mxu1 %v2416_v34 }
  0x61   :  { %618 = vmatprep.subr.bf16.mxu1 %v2423_v35  ;;  %2239 = vmatpush3.bf16.msra.mxu0 %v2440_v60 }
  0x62   :  { %476 = vmatmul.mubr.bf16.gmra.mxu0 %v2404_v36  ;;  %556 = vmatmul.mubr.bf16.gmra.mxu1 %v2854_v37 }
  0x63   :  { %485 = vmatprep.mubr.bf16.mxu0 %v2794_v0  ;;  %565 = vmatprep.mubr.bf16.mxu1 %v2794_v0 }
  0x64   :  { %619 = vmatpush1.bf16.msra.mxu1 %v2421_v38  ;;  %2240 = vmatprep.subr.bf16.mxu0 %v2441_v61 }
  0x65   :  { %620 = vmatprep.subr.bf16.mxu1 %v2428_v39  ;;  %2241 = vmatpush3.bf16.msra.mxu0 %v2442_v62 }
  0x66   :  { %2242 = vmatprep.subr.bf16.mxu0 %v2443_v63 }
  0x68   :  { %621 = vmatpush1.bf16.msra.mxu1 %v2426_v40 }
  0x69   :  { %2243 = vmatpush3.bf16.msra.mxu0 %v2444_v1 }
  0x6a   :  { %486 = vmatmul.mubr.bf16.gmra.mxu0 %v2409_v41  ;;  %566 = vmatmul.mubr.bf16.gmra.mxu1 %v2859_v42 }
  0x6b   :  { %495 = vmatprep.mubr.bf16.mxu0 %v2794_v0  ;;  %575 = vmatprep.mubr.bf16.mxu1 %v2794_v0 }
  0x72   :  { %496 = vmatmul.mubr.bf16.gmra.mxu0 %v2414_v43  ;;  %576 = vmatmul.mubr.bf16.gmra.mxu1 %v2415_v44 }
  0x73   :  { %505 = vmatprep.mubr.bf16.mxu0 %v2794_v0  ;;  %585 = vmatprep.mubr.bf16.mxu1 %v2794_v0 }
  0x7a   :  { %506 = vmatmul.mubr.bf16.gmra.mxu0 %v2419_v45  ;;  %586 = vmatmul.mubr.bf16.gmra.mxu1 %v2420_v46 }
  0x7b   :  { %515 = vmatprep.mubr.bf16.mxu0 %v2794_v0  ;;  %595 = vmatprep.mubr.bf16.mxu1 %v2794_v0 }
  0x82   :  { %516 = vmatmul.mubr.bf16.gmra.mxu0 %v2424_v47  ;;  %596 = vmatmul.mubr.bf16.gmra.mxu1 %v2425_v48 }
  0x83   :  { %638 = vmatprep.mubr.bf16.mxu1 %v2794_v0 }
  0x8a   :  { %639 = vmatmul.mubr.bf16.vlgmr.msra.gmra.mxu1 %v2833_v18 }
  0x8b   :  { %648 = vmatprep.mubr.bf16.mxu1 %v2794_v0 }
  0x92   :  { %649 = vmatmul.mubr.bf16.gmra.mxu1 %v2841_v23 }
  0x93   :  { %658 = vmatprep.mubr.bf16.mxu1 %v2794_v0 }
  0x9a   :  { %659 = vmatmul.mubr.bf16.gmra.mxu1 %v2399_v30 }
  0x9b   :  { %668 = vmatprep.mubr.bf16.mxu1 %v2794_v0 }
  0xa2   :  { %669 = vmatmul.mubr.bf16.gmra.mxu1 %v2404_v36 }
  0xa3   :  { %678 = vmatprep.mubr.bf16.mxu1 %v2794_v0 }
  0xaa   :  { %679 = vmatmul.mubr.bf16.gmra.mxu1 %v2409_v41 }
  0xab   :  { %688 = vmatprep.mubr.bf16.mxu1 %v2794_v0 }
  0xb2   :  { %689 = vmatmul.mubr.bf16.gmra.mxu1 %v2414_v43 }
  0xb3   :  { %698 = vmatprep.mubr.bf16.mxu1 %v2794_v0 }
  0xba   :  { %699 = vmatmul.mubr.bf16.gmra.mxu1 %v2419_v45 }
  0xbb   :  { %708 = vmatprep.mubr.bf16.mxu1 %v2794_v0 }
  0xc2   :  { %709 = vmatmul.mubr.bf16.gmra.mxu1 %v2424_v47 }
  0xc3   :  { %718 = vmatprep.mubr.bf16.mxu1 %v2794_v0 }
  0xca   :  { %719 = vmatmul.mubr.bf16.gmra.mxu1 %v2835_v19 }
  0xcb   :  { %728 = vmatprep.mubr.bf16.mxu1 %v2794_v0 }
  0xd2   :  { %729 = vmatmul.mubr.bf16.gmra.mxu1 %v2843_v25 }
  0xd3   :  { %738 = vmatprep.mubr.bf16.mxu1 %v2794_v0 }
  0xda   :  { %739 = vmatmul.mubr.bf16.gmra.mxu1 %v2849_v31 }
  0xdb   :  { %748 = vmatprep.mubr.bf16.mxu1 %v2794_v0 }
  0xe2   :  { %749 = vmatmul.mubr.bf16.gmra.mxu1 %v2854_v37 }
  0xe3   :  { %758 = vmatprep.mubr.bf16.mxu1 %v2794_v0 }
  0xea   :  { %759 = vmatmul.mubr.bf16.gmra.mxu1 %v2859_v42 }
  0xeb   :  { %768 = vmatprep.mubr.bf16.mxu1 %v2794_v0 }
  0xf2   :  { %769 = vmatmul.mubr.bf16.gmra.mxu1 %v2415_v44 }
  0xf3   :  { %778 = vmatprep.mubr.bf16.mxu1 %v2794_v0 }
  0xfa   :  { %779 = vmatmul.mubr.bf16.gmra.mxu1 %v2420_v46 }
  0xfb   :  { %788 = vmatprep.mubr.bf16.mxu1 %v2794_v0 }
 0x102   :  { %789 = vmatmul.mubr.bf16.gmra.mxu1 %v2425_v48 }
 0x10a   :  { %v2891_v2 = vpop.f32.mrf.mxu0  ;;  %v2893_v3 = vpop.f32.mrf.mxu1 }
 0x10b   :  { %v1989_v24 = vmul.f32 -1.442695, %v2891_v2 }
 0x10c   :  { %v2895_v4 = vpop.f32.mrf.mxu0  ;;  %v2897_v5 = vpop.f32.mrf.mxu1 }
 0x10d   :  { %v1990_v26 = vmul.f32 -1.442695, %v2895_v4  ;;  %2445 = vpow2.f32 %v1989_v24 }
 0x10e   :  { %v2899_v0 = vpop.f32.mrf.mxu0  ;;  %v2901_v6 = vpop.f32.mrf.mxu1 }
 0x10f   :  { %v1991_v29 = vmul.f32 -1.442695, %v2899_v0  ;;  %2447 = vpow2.f32 %v1990_v26 }
 0x110   :  { %v2903_v7 = vpop.f32.mrf.mxu0  ;;  %v2905_v8 = vpop.f32.mrf.mxu1 }
 0x111   :  { %v1992_v31 = vmul.f32 -1.442695, %v2903_v7  ;;  %2449 = vpow2.f32 %v1991_v29 }
 0x112   :  { %v2907_v9 = vpop.f32.mrf.mxu0  ;;  %v2909_v10 = vpop.f32.mrf.mxu1 }
 0x113   :  { %2451 = vpow2.f32 %v1992_v31  ;;  %v1993_v41 = vmul.f32 -1.442695, %v2907_v9 }
 0x114   :  { %v2911_v11 = vpop.f32.mrf.mxu0  ;;  %v2913_v12 = vpop.f32.mrf.mxu1 }
 0x115   :  { %v1994_v37 = vmul.f32 -1.442695, %v2911_v11 }
 0x116   :  { %v2915_v13 = vpop.f32.mrf.mxu0  ;;  %v2917_v14 = vpop.f32.mrf.mxu1 }
 0x117   :  { %v1995_v38 = vmul.f32 -1.442695, %v2915_v13  ;;  %2453 = vpow2.f32 %v1994_v37 }
 0x118   :  { %v2919_v15 = vpop.f32.mrf.mxu0  ;;  %v2921_v16 = vpop.f32.mrf.mxu1 }
 0x119   :  { %v1996_v40 = vmul.f32 -1.442695, %v2919_v15  ;;  %2455 = vpow2.f32 %v1995_v38 }
 0x11a   :  { %v2923_v17 = vpop.f32.mrf.mxu0  ;;  %v2925_v18 = vpop.f32.mrf.mxu1 }
 0x11b   :  { %v2446_v45 = vpop.eup %2445  ;;  %2457 = vpow2.f32 %v1996_v40  ;;  %v1997_v57 = vmul.f32 -1.442695, %v2923_v17 }
 0x11c   :  { %v2927_v19 = vpop.f32.mrf.mxu0  ;;  %v2929_v20 = vpop.f32.mrf.mxu1  ;;  %2459 = vpow2.f32 %v1993_v41  ;;  %v991_v53 = vadd.f32 1.0, %v2446_v45 }
 0x11d   :  { %v1998_v46 = vmul.f32 -1.442695, %v2927_v19  ;;  %v2448_v47 = vpop.eup %2447 }
 0x11e   :  { %v2931_v21 = vpop.f32.mrf.mxu1  ;;  %v2933_v22 = vpop.f32.mrf.mxu0  ;;  %v992_v55 = vadd.f32 1.0, %v2448_v47 }
 0x11f   :  { %v1999_v48 = vmul.f32 -1.442695, %v2933_v22  ;;  %v2450_v52 = vpop.eup %2449  ;;  %2461 = vpow2.f32 %v1998_v46 }
 0x120   :  { %v2935_v23 = vpop.f32.mrf.mxu1  ;;  %v2941_v27 = vpop.f32.mrf.mxu0  ;;  %v993_v60 = vadd.f32 1.0, %v2450_v52 }
 0x121   :  { %v2000_v51 = vmul.f32 -1.442695, %v2941_v27  ;;  %v2452_v56 = vpop.eup %2451  ;;  %2463 = vpow2.f32 %v1999_v48 }
 0x122   :  { %v2938_v25 = vpop.f32.mrf.mxu1  ;;  %v2949_v32 = vpop.f32.mrf.mxu0  ;;  %v994_v63 = vadd.f32 1.0, %v2452_v56 }
 0x123   :  { %2465 = vpow2.f32 %v2000_v51  ;;  %v2001_v41 = vmul.f32 -1.442695, %v2949_v32 }
 0x124   :  { %v2943_v28 = vpop.f32.mrf.mxu1  ;;  %v2955_v35 = vpop.f32.mrf.mxu0  ;;  %2467 = vrcp.f32 %v991_v53 }
 0x125   :  { %v2002_v61 = vmul.f32 -1.442695, %v2955_v35  ;;  %2469 = vrcp.f32 %v992_v55  ;;  %v2454_v31 = vpop.eup %2453 }
 0x126   :  { %v2946_v30 = vpop.f32.mrf.mxu1  ;;  %v2965_v42 = vpop.f32.mrf.mxu0  ;;  %2471 = vpow2.f32 %v1997_v57  ;;  %v996_v48 = vadd.f32 1.0, %v2454_v31 }
 0x127   :  { %v2003_v1 = vmul.f32 -1.442695, %v2965_v42  ;;  %2473 = vrcp.f32 %v993_v60  ;;  %v2456_v38 = vpop.eup %2455 }
 0x128   :  { %v2951_v33 = vpop.f32.mrf.mxu1  ;;  %v2973_v49 = vpop.f32.mrf.mxu0  ;;  %2475 = vpow2.f32 %v2002_v61  ;;  %v997_v51 = vadd.f32 1.0, %v2456_v38 }
 0x129   :  { %v2004_v29 = vmul.f32 -1.442695, %v2973_v49  ;;  %2477 = vrcp.f32 %v994_v63  ;;  %v2458_v40 = vpop.eup %2457  ;;  %v2021_v63 = vmul.f32 -1.442695, %v2893_v3 }
 0x12a   :  { %v2953_v34 = vpop.f32.mrf.mxu1  ;;  %v2981_v58 = vpop.f32.mrf.mxu0  ;;  %2479 = vpow2.f32 %v2003_v1  ;;  %v998_v53 = vadd.f32 1.0, %v2458_v40 }
 0x12b   :  { %3292 = vst [vmem:[#allocation13_spill] sm:$0xff] %v2953_v34  ;;  %v2460_v47 = vpop.eup %2459  ;;  %2481 = vpow2.f32 %v2004_v29 }
 0x12c   :  { %v2957_v36 = vpop.f32.mrf.mxu1  ;;  %v2989_v24 = vpop.f32.mrf.mxu0  ;;  %v995_v56 = vadd.f32 1.0, %v2460_v47  ;;  %2483 = vpow2.f32 %v2001_v41 }
 0x12d   :  { %v2462_v55 = vpop.eup %2461  ;;  %2485 = vrcp.f32 %v996_v48 }
 0x12e   :  { %v2961_v39 = vpop.f32.mrf.mxu1  ;;  %v2997_v45 = vpop.f32.mrf.mxu0  ;;  %2487 = vrcp.f32 %v997_v51  ;;  %v1000_v38 = vadd.f32 1.0, %v2462_v55 }
 0x12f   :  { %3293 = vst [vmem:[#allocation14_spill] sm:$0xff] %v2961_v39  ;;  %v2464_v61 = vpop.eup %2463  ;;  %2489 = vrcp.f32 %v998_v53  ;;  %v2006_v53 = vmul.f32 -1.442695, %v2989_v24 }
 0x130   :  { %v2967_v43 = vpop.f32.mrf.mxu1  ;;  %v3003_v57 = vpop.f32.mrf.mxu0  ;;  %2491 = vrcp.f32 %v995_v56  ;;  %v1001_v41 = vadd.f32 1.0, %v2464_v61 }
 0x131   :  { %3294 = vst [vmem:[#allocation15_spill] sm:$0xff] %v2967_v43  ;;  %v2466_v1 = vpop.eup %2465  ;;  %2493 = vpow2.f32 %v2021_v63  ;;  %v2007_v63 = vmul.f32 -1.442695, %v2997_v45 }
 0x132   :  { %v2969_v44 = vpop.f32.mrf.mxu1  ;;  %v2468_v31 = vpop.eup %2467 }
 0x133   :  { %3295 = vst [vmem:[#allocation16_spill] sm:$0xff] %v2969_v44  ;;  %v2470_v40 = vpop.eup %2469  ;;  %v3011_v47 = vpop.f32.mrf.mxu0  ;;  %v2005_v44 = vmul.f32 -1.442695, %v2981_v58 }
 0x134   :  { %v2975_v50 = vpop.f32.mrf.mxu1 }
 0x135   :  { %3296 = vst [vmem:[#allocation17_spill] sm:$0xff] %v2975_v50  ;;  %v3017_v56 = vpop.f32.mrf.mxu0 }
 0x136   :  { %v2978_v54 = vpop.f32.mrf.mxu1 }
 0x137   :  { %3297 = vst [vmem:[#allocation18_spill] sm:$0xff] %v2978_v54 }
 0x138   :  { %v2983_v59 = vpop.f32.mrf.mxu1 }
 0x139   :  { %3298 = vst [vmem:[#allocation19_spill] sm:$0xff] %v2983_v59 }
 0x13a   :  { %v2986_v62 = vpop.f32.mrf.mxu1 }
 0x13b   :  { %3299 = vst [vmem:[#allocation20_spill] sm:$0xff] %v2986_v62  ;;  %v2022_v62 = vmul.f32 -1.442695, %v2897_v5 }
 0x13c   :  { %v2991_v26 = vpop.f32.mrf.mxu1 }
 0x13d   :  { %3300 = vst [vmem:[#allocation21_spill] sm:$0xff] %v2991_v26  ;;  %2495 = vpow2.f32 %v2022_v62 }
 0x13e   :  { %v2994_v37 = vpop.f32.mrf.mxu1  ;;  %2497 = vrcp.f32 %v1000_v38  ;;  %v1184_v38 = vmul.f32 %v2470_v40, %v2895_v4  ;;  %v2009_v4 = vmul.f32 -1.442695, %v3011_v47 }
 0x13f   :  { %3301 = vst [vmem:[#allocation22_spill] sm:$0xff] %v2994_v37  ;;  %v1002_v37 = vadd.f32 1.0, %v2466_v1  ;;  %2499 = vrcp.f32 %v1001_v41  ;;  %v1183_v41 = vmul.f32 %v2468_v31, %v2891_v2  ;;  %v2010_v2 = vmul.f32 -1.442695, %v3017_v56 }
 0x140   :  { %v2999_v46 = vpop.f32.mrf.mxu1 }
 0x141   :  { %3302 = vst [vmem:[#allocation23_spill] sm:$0xff] %v2999_v46  ;;  %2501 = vrcp.f32 %v1002_v37  ;;  %v3025_v37 = vpop.f32.mrf.mxu0 }
 0x142   :  { %v3001_v52 = vpop.f32.mrf.mxu1 }
 0x143   :  { %3303 = vst [vmem:[#allocation24_spill] sm:$0xff] %v3001_v52 }
 0x144   :  { %v3005_v60 = vpop.f32.mrf.mxu1 }
 0x145   :  { %3304 = vst [vmem:[#allocation25_spill] sm:$0xff] %v3005_v60  ;;  %v2472_v60 = vpop.eup %2471  ;;  %2503 = vpow2.f32 %v2005_v44 }
 0x146   :  { %v3009_v29 = vpop.f32.mrf.mxu1  ;;  %v2474_v48 = vpop.eup %2473  ;;  %2505 = vpow2.f32 %v2006_v53 }
 0x147   :  { %3305 = vst [vmem:[#allocation26_spill] sm:$0xff] %v3009_v29  ;;  %v2476_v26 = vpop.eup %2475  ;;  %v999_v29 = vadd.f32 1.0, %v2472_v60  ;;  %v1185_v62 = vmul.f32 %v2474_v48, %v2899_v0  ;;  %v2008_v60 = vmul.f32 -1.442695, %v3003_v57 }
 0x148   :  { %v3013_v52 = vpop.f32.mrf.mxu1  ;;  %v2478_v55 = vpop.eup %2477 }
 0x149   :  { %3306 = vst [vmem:[#allocation27_spill] sm:$0xff] %v3013_v52  ;;  %v2480_v54 = vpop.eup %2479  ;;  %v1004_v52 = vadd.f32 1.0, %v2476_v26  ;;  %v1186_v34 = vmul.f32 %v2478_v55, %v2903_v7  ;;  %2507 = vrcp.f32 %v999_v29 }
 0x14a   :  { %v640_v51 = vpop.f32.mrf.mxu1  ;;  %v2482_v1 = vpop.eup %2481  ;;  %v1005_v50 = vadd.f32 1.0, %v2480_v54  ;;  %2509 = vpow2.f32 %v2007_v63 }
 0x14b   :  { %v2484_v43 = vpop.eup %2483  ;;  %v1006_v0 = vadd.f32 1.0, %v2482_v1  ;;  %2511 = vrcp.f32 %v1004_v52  ;;  %v1247_v7 = vmul.f32 %v1183_v41, %v640_v51 }
 0x14c   :  { %v642_v61 = vpop.f32.mrf.mxu1  ;;  %v2486_v48 = vpop.eup %2485  ;;  %2513 = vpow2.f32 %v2008_v60  ;;  %v1003_v31 = vadd.f32 1.0, %v2484_v43 }
 0x14d   :  { %v1248_v44 = vmul.f32 %v1184_v38, %v642_v61  ;;  %v2488_v53 = vpop.eup %2487  ;;  %2515 = vrcp.f32 %v1005_v50  ;;  %v1188_v43 = vmul.f32 %v2486_v48, %v2911_v11  ;;  %v2023_v38 = vmul.f32 -1.442695, %v2901_v6 }
 0x14e   :  { %v644_v46 = vpop.f32.mrf.mxu1  ;;  %v2490_v29 = vpop.eup %2489  ;;  %2517 = vrcp.f32 %v1006_v0  ;;  %v1189_v52 = vmul.f32 %v2488_v53, %v2915_v13 }
 0x14f   :  { %v1249_v39 = vmul.f32 %v1185_v62, %v644_v46  ;;  %v3029_v46 = vpop.f32.mrf.mxu0  ;;  %v2492_v61 = vpop.eup %2491  ;;  %2519 = vpow2.f32 %v2009_v4  ;;  %v1190_v50 = vmul.f32 %v2490_v29, %v2919_v15  ;;  %v2024_v15 = vmul.f32 -1.442695, %v2905_v8 }
 0x150   :  { %v646_v59 = vpop.f32.mrf.mxu1  ;;  %2521 = vpow2.f32 %v2010_v2  ;;  %v1187_v60 = vmul.f32 %v2492_v61, %v2907_v9 }
 0x151   :  { %v1250_v26 = vmul.f32 %v1186_v34, %v646_v59  ;;  %v1343_v55 = vpack.c.bf16 %v1249_v39, %v1247_v7  ;;  %v2011_v34 = vmul.f32 -1.442695, %v3025_v37  ;;  %v3032_v59 = vpop.eup %2493  ;;  %v2012_v39 = vmul.f32 -1.442695, %v3029_v46  ;;  %v3042_v41 = vpop.f32.mrf.mxu0 }
 0x152   :  { %v650_v40 = vpop.f32.mrf.mxu1  ;;  %v3035_v1 = vpop.eup %2495  ;;  %2523 = vrcp.f32 %v1003_v31 }
 0x153   :  { %v1344_v54 = vpack.c.bf16 %v1250_v26, %v1248_v44  ;;  %v2498_v62 = vpop.eup %2497  ;;  %2525 = vpow2.f32 %v2011_v34  ;;  %v1251_v48 = vmul.f32 %v1187_v60, %v650_v40  ;;  %v3045_v9 = vpop.f32.mrf.mxu0 }
 0x154   :  { %v652_v63 = vpop.f32.mrf.mxu1  ;;  %v2500_v44 = vpop.eup %2499  ;;  %2527 = vpow2.f32 %v2012_v39 }
 0x155   :  { %1535 = vmatprep.mubr.bf16.mxu0 %v1344_v54  ;;  %v1252_v26 = vmul.f32 %v1188_v43, %v652_v63  ;;  %v2502_v11 = vpop.eup %2501  ;;  %2529 = vpow2.f32 %v2023_v38  ;;  %v1193_v63 = vmul.f32 %v2500_v44, %v2933_v22  ;;  %v2025_v43 = vmul.f32 -1.442695, %v2909_v10 }
 0x156   :  { %v654_v51 = vpop.f32.mrf.mxu1  ;;  %1536 = vmatmul.mubr.bf16.vlgmr.msra.gmra.mxu0 %v1343_v55  ;;  %v2504_v53 = vpop.eup %2503  ;;  %2531 = vpow2.f32 %v2024_v15  ;;  %v1194_v39 = vmul.f32 %v2502_v11, %v2941_v27 }
 0x157   :  { %v1253_v13 = vmul.f32 %v1189_v52, %v654_v51  ;;  %v2506_v54 = vpop.eup %2505  ;;  %v1007_v52 = vadd.f32 1.0, %v2504_v53 }
 0x158   :  { %v656_v0 = vpop.f32.mrf.mxu1  ;;  %v2508_v55 = vpop.eup %2507  ;;  %v1008_v61 = vadd.f32 1.0, %v2506_v54  ;;  %v2028_v54 = vmul.f32 -1.442695, %v2921_v16 }
 0x159   :  { %v1254_v4 = vmul.f32 %v1190_v50, %v656_v0  ;;  %v1345_v29 = vpack.c.bf16 %v1253_v13, %v1251_v48  ;;  %v2510_v34 = vpop.eup %2509  ;;  %v1192_v50 = vmul.f32 %v2498_v62, %v2927_v19  ;;  %v2026_v13 = vmul.f32 -1.442695, %v2913_v12 }
 0x15a   :  { %v660_v7 = vpop.f32.mrf.mxu1  ;;  %v2512_v40 = vpop.eup %2511  ;;  %v1009_v38 = vadd.f32 1.0, %v2510_v34  ;;  %v1191_v0 = vmul.f32 %v2508_v55, %v2923_v17  ;;  %2533 = vrcp.f32 %v1008_v61  ;;  %v2027_v19 = vmul.f32 -1.442695, %v2917_v14 }
 0x15b   :  { %v1346_v2 = vpack.c.bf16 %v1254_v4, %v1252_v26  ;;  %v2514_v60 = vpop.eup %2513  ;;  %v3053_v26 = vpop.f32.mrf.mxu0 }
 0x15c   :  { %v662_v31 = vpop.f32.mrf.mxu1  ;;  %v2516_v4 = vpop.eup %2515  ;;  %2535 = vrcp.f32 %v1009_v38  ;;  %v1010_v15 = vadd.f32 1.0, %v2514_v60  ;;  %v1255_v27 = vmul.f32 %v1191_v0, %v660_v7 }
 0x15d   :  { %1543 = vmatprep.mubr.bf16.mxu0 %v1346_v2  ;;  %v1256_v48 = vmul.f32 %v1192_v50, %v662_v31  ;;  %v2518_v2 = vpop.eup %2517  ;;  %2537 = vrcp.f32 %v1007_v52  ;;  %v3057_v55 = vpop.f32.mrf.mxu0  ;;  %v1023_v52 = vadd.f32 1.0, %v3032_v59  ;;  %v1197_v7 = vmul.f32 %v2516_v4, %v2965_v42 }
 0x15e   :  { %v664_v51 = vpop.f32.mrf.mxu1  ;;  %1544 = vmatmul.mubr.bf16.gmra.mxu0 %v1345_v29  ;;  %v2520_v11 = vpop.eup %2519  ;;  %2539 = vrcp.f32 %v1010_v15  ;;  %v1198_v38 = vmul.f32 %v2518_v2, %v2973_v49 }
 0x15f   :  { %v1257_v22 = vmul.f32 %v1193_v63, %v664_v51  ;;  %v2522_v29 = vpop.eup %2521  ;;  %2541 = vpow2.f32 %v2025_v43  ;;  %v1011_v50 = vadd.f32 1.0, %v2520_v11  ;;  %v1196_v43 = vmul.f32 %v2512_v40, %v2955_v35 }
 0x160   :  { %v666_v44 = vpop.f32.mrf.mxu1  ;;  %v2524_v63 = vpop.eup %2523  ;;  %2543 = vpow2.f32 %v2026_v13  ;;  %v1012_v31 = vadd.f32 1.0, %v2522_v29  ;;  %v1024_v13 = vadd.f32 1.0, %v3035_v1  ;;  %v2013_v35 = vmul.f32 -1.442695, %v3042_v41 }
 0x161   :  { %v1258_v53 = vmul.f32 %v1194_v39, %v666_v44  ;;  %v1347_v61 = vpack.c.bf16 %v1257_v22, %v1255_v27  ;;  %v2526_v51 = vpop.eup %2525  ;;  %2545 = vpow2.f32 %v2027_v19  ;;  %v1195_v22 = vmul.f32 %v2524_v63, %v2949_v32  ;;  %v3065_v44 = vpop.f32.mrf.mxu0 }
 0x162   :  { %v670_v62 = vpop.f32.mrf.mxu1  ;;  %2547 = vpow2.f32 %v2028_v54  ;;  %v1013_v60 = vadd.f32 1.0, %v2526_v51  ;;  %v2528_v0 = vpop.eup %2527  ;;  %v2014_v1 = vmul.f32 -1.442695, %v3045_v9  ;;  %v2015_v29 = vmul.f32 -1.442695, %v3053_v26 }
 0x163   :  { %v1348_v17 = vpack.c.bf16 %v1258_v53, %v1256_v48  ;;  %2549 = vrcp.f32 %v1012_v31  ;;  %v2530_v42 = vpop.eup %2529  ;;  %v1014_v4 = vadd.f32 1.0, %v2528_v0  ;;  %v1259_v49 = vmul.f32 %v1195_v22, %v670_v62  ;;  %v3069_v27 = vpop.f32.mrf.mxu0 }
 0x164   :  { %v672_v34 = vpop.f32.mrf.mxu1  ;;  %2551 = vrcp.f32 %v1013_v60  ;;  %v2532_v2 = vpop.eup %2531  ;;  %v1025_v19 = vadd.f32 1.0, %v2530_v42  ;;  %v2016_v31 = vmul.f32 -1.442695, %v3057_v55 }
 0x165   :  { %1551 = vmatprep.mubr.bf16.mxu0 %v1348_v17  ;;  %v1260_v48 = vmul.f32 %v1196_v43, %v672_v34  ;;  %2553 = vrcp.f32 %v1011_v50  ;;  %v1026_v34 = vadd.f32 1.0, %v2532_v2  ;;  %v3075_v50 = vpop.f32.mrf.mxu0 }
 0x166   :  { %v674_v39 = vpop.f32.mrf.mxu1  ;;  %1552 = vmatmul.mubr.bf16.gmra.mxu0 %v1347_v61  ;;  %2555 = vrcp.f32 %v1014_v4  ;;  %v2018_v4 = vmul.f32 -1.442695, %v3069_v27 }
 0x167   :  { %v1261_v59 = vmul.f32 %v1197_v7, %v674_v39  ;;  %2557 = vrcp.f32 %v1023_v52  ;;  %v2534_v17 = vpop.eup %2533  ;;  %v2029_v52 = vmul.f32 -1.442695, %v2925_v18 }
 0x168   :  { %v676_v15 = vpop.f32.mrf.mxu1  ;;  %2559 = vrcp.f32 %v1024_v13  ;;  %v1200_v60 = vmul.f32 %v2534_v17, %v2989_v24 }
 0x169   :  { %v1262_v53 = vmul.f32 %v1198_v38, %v676_v15  ;;  %v1349_v11 = vpack.c.bf16 %v1261_v59, %v1259_v49  ;;  %v2536_v61 = vpop.eup %2535  ;;  %2561 = vpow2.f32 %v2013_v35  ;;  %v2030_v38 = vmul.f32 -1.442695, %v2929_v20  ;;  %v3092_v35 = vpop.f32.mrf.mxu0 }
 0x16a   :  { %v680_v40 = vpop.f32.mrf.mxu1  ;;  %v2538_v63 = vpop.eup %2537  ;;  %2563 = vpow2.f32 %v2014_v1  ;;  %v1201_v7 = vmul.f32 %v2536_v61, %v2997_v45  ;;  %v2017_v59 = vmul.f32 -1.442695, %v3065_v44  ;;  %v2019_v1 = vmul.f32 -1.442695, %v3075_v50 }
 0x16b   :  { %v1350_v32 = vpack.c.bf16 %v1262_v53, %v1260_v48  ;;  %v2540_v51 = vpop.eup %2539  ;;  %2565 = vrcp.f32 %v1025_v19  ;;  %v1199_v22 = vmul.f32 %v2538_v63, %v2981_v58  ;;  %v2020_v61 = vmul.f32 -1.442695, %v3092_v35 }
 0x16c   :  { %v682_v54 = vpop.f32.mrf.mxu1  ;;  %v3077_v43 = vpop.eup %2541  ;;  %v1202_v0 = vmul.f32 %v2540_v51, %v3003_v57  ;;  %2567 = vpow2.f32 %v2015_v29  ;;  %v2031_v57 = vmul.f32 -1.442695, %v2931_v21  ;;  %v2034_v51 = vmul.f32 -1.442695, %v2943_v28 }
 0x16d   :  { %1559 = vmatprep.mubr.bf16.mxu0 %v1350_v32  ;;  %v3082_v13 = vpop.eup %2543  ;;  %2569 = vrcp.f32 %v1026_v34  ;;  %v1264_v48 = vmul.f32 %v1200_v60, %v682_v54  ;;  %v1263_v49 = vmul.f32 %v1199_v22, %v680_v40  ;;  %v2033_v40 = vmul.f32 -1.442695, %v2938_v25 }
 0x16e   :  { %v684_v62 = vpop.f32.mrf.mxu1  ;;  %1560 = vmatmul.mubr.bf16.gmra.mxu0 %v1349_v11  ;;  %v3086_v42 = vpop.eup %2545  ;;  %2571 = vpow2.f32 %v2016_v31  ;;  %v2032_v11 = vmul.f32 -1.442695, %v2935_v23 }
 0x16f   :  { %v1265_v45 = vmul.f32 %v1201_v7, %v684_v62  ;;  %v3089_v24 = vpop.eup %2547  ;;  %2573 = vpow2.f32 %v2029_v52 }
 0x170   :  { %v686_v39 = vpop.f32.mrf.mxu1  ;;  %v2550_v2 = vpop.eup %2549  ;;  %2575 = vpow2.f32 %v2030_v38  ;;  %v2035_v38 = vmul.f32 -1.442695, %v2946_v30 }
 0x171   :  { %v1266_v53 = vmul.f32 %v1202_v0, %v686_v39  ;;  %v2552_v19 = vpop.eup %2551  ;;  %2577 = vpow2.f32 %v2017_v59  ;;  %v1351_v54 = vpack.c.bf16 %v1265_v45, %v1263_v49  ;;  %v1204_v52 = vmul.f32 %v2550_v2, %v3017_v56 }
 0x172   :  { %v690_v15 = vpop.f32.mrf.mxu1  ;;  %v2554_v29 = vpop.eup %2553  ;;  %2579 = vpow2.f32 %v2018_v4  ;;  %v1205_v62 = vmul.f32 %v2552_v19, %v3025_v37  ;;  %v2036_v59 = vmul.f32 -1.442695, %v2951_v33 }
 0x173   :  { %v1352_v32 = vpack.c.bf16 %v1266_v53, %v1264_v48  ;;  %v2556_v34 = vpop.eup %2555  ;;  %2581 = vpow2.f32 %v2031_v57  ;;  %v1203_v60 = vmul.f32 %v2554_v29, %v3011_v47  ;;  %v1029_v29 = vadd.f32 1.0, %v3086_v42 }
 0x174   :  { %v692_v58 = vpop.f32.mrf.mxu1  ;;  %v3099_v31 = vpop.eup %2557  ;;  %v1206_v7 = vmul.f32 %v2556_v34, %v3029_v46  ;;  %2583 = vpow2.f32 %v2019_v1 }
 0x175   :  { %1567 = vmatprep.mubr.bf16.mxu0 %v1352_v32  ;;  %v3104_v39 = vpop.eup %2559  ;;  %2585 = vpow2.f32 %v2032_v11  ;;  %v1268_v45 = vmul.f32 %v1204_v52, %v692_v58  ;;  %v1267_v46 = vmul.f32 %v1203_v60, %v690_v15  ;;  %v1027_v15 = vadd.f32 1.0, %v3077_v43 }
 0x176   :  { %v694_v17 = vpop.f32.mrf.mxu1  ;;  %1568 = vmatmul.mubr.bf16.gmra.mxu0 %v1351_v54  ;;  %v2562_v22 = vpop.eup %2561  ;;  %2587 = vpow2.f32 %v2020_v61 }
 0x177   :  { %v1269_v0 = vmul.f32 %v1205_v62, %v694_v17  ;;  %v2564_v56 = vpop.eup %2563  ;;  %2589 = vpow2.f32 %v2033_v40  ;;  %v1015_v2 = vadd.f32 1.0, %v2562_v22  ;;  %v1028_v40 = vadd.f32 1.0, %v3082_v13 }
 0x178   :  { %v696_v63 = vpop.f32.mrf.mxu1  ;;  %v3113_v53 = vpop.eup %2565  ;;  %2591 = vpow2.f32 %v2034_v51  ;;  %v1016_v57 = vadd.f32 1.0, %v2564_v56  ;;  %v1030_v51 = vadd.f32 1.0, %v3089_v24 }
 0x179   :  { %v1270_v4 = vmul.f32 %v1206_v7, %v696_v63  ;;  %v2568_v47 = vpop.eup %2567  ;;  %2593 = vpow2.f32 %v2035_v38  ;;  %v1353_v1 = vpack.c.bf16 %v1269_v0, %v1267_v46 }
 0x17a   :  { %v3108_v37 = vpop.f32.mrf.mxu1  ;;  %v3117_v19 = vpop.eup %2569  ;;  %2595 = vpow2.f32 %v2036_v59  ;;  %v1017_v58 = vadd.f32 1.0, %v2568_v47 }
 0x17b   :  { %v1354_v49 = vpack.c.bf16 %v1270_v4, %v1268_v45  ;;  %v2572_v11 = vpop.eup %2571  ;;  %2597 = vrcp.f32 %v1016_v57 }
 0x17c   :  { %v3111_v48 = vpop.f32.mrf.mxu1  ;;  %v2574_v17 = vpop.eup %2573  ;;  %2599 = vrcp.f32 %v1017_v58  ;;  %v1018_v61 = vadd.f32 1.0, %v2572_v11 }
 0x17d   :  { %1575 = vmatprep.mubr.bf16.mxu0 %v1354_v49  ;;  %v2576_v34 = vpop.eup %2575  ;;  %2601 = vrcp.f32 %v1015_v2  ;;  %v1031_v45 = vadd.f32 1.0, %v2574_v17  ;;  %v1215_v17 = vmul.f32 %v3099_v31, %v2893_v3 }
 0x17e   :  { %v3115_v32 = vpop.f32.mrf.mxu1  ;;  %1576 = vmatmul.mubr.bf16.gmra.mxu0 %v1353_v1  ;;  %v2578_v63 = vpop.eup %2577  ;;  %2603 = vrcp.f32 %v1018_v61  ;;  %v1032_v49 = vadd.f32 1.0, %v2576_v34  ;;  %v1217_v61 = vmul.f32 %v3113_v53, %v2901_v6  ;;  %v1216_v34 = vmul.f32 %v3104_v39, %v2897_v5 }
 0x17f   :  { %v2580_v43 = vpop.eup %2579  ;;  %2605 = vrcp.f32 %v1027_v15  ;;  %v1019_v60 = vadd.f32 1.0, %v2578_v63  ;;  %v2038_v63 = vmul.f32 -1.442695, %v2957_v36 }
 0x180   :  { %v3120_v54 = vpop.f32.mrf.mxu1  ;;  %v2582_v7 = vpop.eup %2581  ;;  %2607 = vrcp.f32 %v1029_v29  ;;  %v1020_v38 = vadd.f32 1.0, %v2580_v43 }
 0x181   :  { %v2584_v42 = vpop.eup %2583  ;;  %2609 = vrcp.f32 %v1028_v40  ;;  %v1033_v56 = vadd.f32 1.0, %v2582_v7 }
 0x182   :  { %v3124_v62 = vpop.f32.mrf.mxu1  ;;  %v2586_v13 = vpop.eup %2585  ;;  %2611 = vrcp.f32 %v1030_v51  ;;  %v1021_v22 = vadd.f32 1.0, %v2584_v42  ;;  %v3307_v51 = vld [vmem:[#allocation15_spill] sm:$0xff]  ;;  %v1218_v42 = vmul.f32 %v3117_v19, %v2905_v8 }
 0x183   :  { %v2588_v59 = vpop.eup %2587  ;;  %2613 = vrcp.f32 %v1020_v38  ;;  %v1034_v1 = vadd.f32 1.0, %v2586_v13  ;;  %v2040_v43 = vmul.f32 -1.442695, %v3307_v51 }
 0x184   :  { %v3127_v52 = vpop.f32.mrf.mxu1  ;;  %v2590_v4 = vpop.eup %2589  ;;  %2615 = vrcp.f32 %v1021_v22  ;;  %v1022_v46 = vadd.f32 1.0, %v2588_v59 }
 0x185   :  { %v2592_v57 = vpop.eup %2591  ;;  %2617 = vrcp.f32 %v1019_v60  ;;  %v1035_v11 = vadd.f32 1.0, %v2590_v4 }
 0x186   :  { %v3129_v0 = vpop.f32.mrf.mxu1  ;;  %v2594_v2 = vpop.eup %2593  ;;  %2619 = vrcp.f32 %v1022_v46  ;;  %v1036_v4 = vadd.f32 1.0, %v2592_v57 }
 0x187   :  { %v2596_v58 = vpop.eup %2595  ;;  %2621 = vrcp.f32 %v1031_v45  ;;  %v1037_v53 = vadd.f32 1.0, %v2594_v2 }
 0x188   :  { %v3131_v24 = vpop.f32.mrf.mxu1  ;;  %v2598_v29 = vpop.eup %2597  ;;  %2623 = vrcp.f32 %v1033_v56  ;;  %v1038_v56 = vadd.f32 1.0, %v2596_v58 }
 0x189   :  { %v2600_v40 = vpop.eup %2599  ;;  %2625 = vrcp.f32 %v1032_v49  ;;  %v1208_v5 = vmul.f32 %v2598_v29, %v3045_v9 }
 0x18a   :  { %v720_v47 = vpop.f32.mrf.mxu1  ;;  %v2602_v38 = vpop.eup %2601  ;;  %2627 = vrcp.f32 %v1034_v1  ;;  %v1209_v39 = vmul.f32 %v2600_v40, %v3053_v26 }
 0x18b   :  { %v3143_v3 = vmul.f32 %v1215_v17, %v720_v47  ;;  %v2604_v6 = vpop.eup %2603  ;;  %2629 = vrcp.f32 %v1035_v11  ;;  %v1207_v46 = vmul.f32 %v2602_v38, %v3042_v41  ;;  %v1272_v47 = vmul.f32 %v1208_v5, %v3111_v48  ;;  %v3310_v38 = vld [vmem:[#allocation17_spill] sm:$0xff] }
 0x18c   :  { %v722_v15 = vpop.f32.mrf.mxu1  ;;  %v2606_v13 = vpop.eup %2605  ;;  %v1210_v22 = vmul.f32 %v2604_v6, %v3057_v55  ;;  %v1273_v9 = vmul.f32 %v1209_v39, %v3115_v32  ;;  %2631 = vpow2.f32 %v2040_v43 }
 0x18d   :  { %v3150_v59 = vmul.f32 %v1216_v34, %v722_v15  ;;  %v2608_v45 = vpop.eup %2607  ;;  %2633 = vrcp.f32 %v1037_v53  ;;  %v1271_v11 = vmul.f32 %v1207_v46, %v3108_v37  ;;  %v1219_v41 = vmul.f32 %v2606_v13, %v2909_v10 }
 0x18e   :  { %v724_v7 = vpop.f32.mrf.mxu1  ;;  %v2610_v26 = vpop.eup %2609  ;;  %v1274_v55 = vmul.f32 %v1210_v22, %v3120_v54  ;;  %v1221_v32 = vmul.f32 %v2608_v45, %v2917_v14  ;;  %2635 = vpow2.f32 %v2038_v63  ;;  %v3308_v54 = vld [vmem:[#allocation19_spill] sm:$0xff]  ;;  %v3309_v63 = vld [vmem:[#allocation14_spill] sm:$0xff]  ;;  %v3311_v45 = vld [vmem:[#allocation13_spill] sm:$0xff] }
 0x18f   :  { %v3145_v31 = vmul.f32 %v1217_v61, %v724_v7  ;;  %v2612_v1 = vpop.eup %2611  ;;  %v1220_v48 = vmul.f32 %v2610_v26, %v2913_v12  ;;  %2637 = vrcp.f32 %v1036_v4  ;;  %v2044_v17 = vmul.f32 -1.442695, %v3308_v54 }
 0x190   :  { %v726_v60 = vpop.f32.mrf.mxu1  ;;  %v2614_v58 = vpop.eup %2613  ;;  %v1356_v15 = vpack.c.bf16 %v1274_v55, %v1272_v47  ;;  %v1355_v61 = vpack.c.bf16 %v1273_v9, %v1271_v11  ;;  %v1222_v43 = vmul.f32 %v2612_v1, %v2921_v16  ;;  %2639 = vrcp.f32 %v1038_v56 }
 0x191   :  { %v1359_v8 = vpack.c.bf16 %v3145_v31, %v3143_v3  ;;  %v3154_v19 = vmul.f32 %v1218_v42, %v726_v60  ;;  %v2616_v29 = vpop.eup %2615  ;;  %v2039_v7 = vmul.f32 -1.442695, %v3309_v63  ;;  %v2042_v42 = vmul.f32 -1.442695, %v3310_v38 }
 0x192   :  { %v730_v49 = vpop.f32.mrf.mxu1  ;;  %v2618_v34 = vpop.eup %2617  ;;  %1583 = vmatprep.mubr.bf16.mxu0 %v1356_v15  ;;  %v1212_v12 = vmul.f32 %v2614_v58, %v3069_v27  ;;  %v1213_v6 = vmul.f32 %v2616_v29, %v3075_v50  ;;  %v2037_v4 = vmul.f32 -1.442695, %v3311_v45  ;;  %2641 = vpow2.f32 %v2044_v17 }
 0x193   :  { %v1360_v2 = vpack.c.bf16 %v3154_v19, %v3150_v59  ;;  %v3168_v37 = vmul.f32 %v1219_v41, %v730_v49  ;;  %v2620_v14 = vpop.eup %2619  ;;  %1584 = vmatmul.mubr.bf16.gmra.mxu0 %v1355_v61  ;;  %v1211_v56 = vmul.f32 %v2618_v34, %v3065_v44  ;;  %2643 = vpow2.f32 %v2039_v7  ;;  %v3314_v61 = vld [vmem:[#allocation21_spill] sm:$0xff] }
 0x194   :  { %v732_v57 = vpop.f32.mrf.mxu1  ;;  %v2622_v5 = vpop.eup %2621  ;;  %v1214_v16 = vmul.f32 %v2620_v14, %v3092_v35  ;;  %v1277_v27 = vmul.f32 %v1213_v6, %v3129_v0  ;;  %v1276_v9 = vmul.f32 %v1212_v12, %v3127_v52  ;;  %2645 = vpow2.f32 %v2042_v42  ;;  %v3315_v14 = vld [vmem:[#allocation16_spill] sm:$0xff] }
 0x195   :  { %v3177_v39 = vmul.f32 %v1220_v48, %v732_v57  ;;  %v2624_v22 = vpop.eup %2623  ;;  %v1275_v47 = vmul.f32 %v1211_v56, %v3124_v62  ;;  %v1223_v44 = vmul.f32 %v2622_v5, %v2925_v18  ;;  %2647 = vpow2.f32 %v2037_v4  ;;  %v3312_v57 = vld [vmem:[#allocation23_spill] sm:$0xff]  ;;  %v3313_v18 = vld [vmem:[#allocation18_spill] sm:$0xff] }
 0x196   :  { %v734_v40 = vpop.f32.mrf.mxu1  ;;  %v2626_v46 = vpop.eup %2625  ;;  %v1278_v35 = vmul.f32 %v1214_v16, %v3131_v24  ;;  %v1225_v0 = vmul.f32 %v2624_v22, %v2931_v21  ;;  %v2048_v52 = vmul.f32 -1.442695, %v3312_v57  ;;  %v2043_v48 = vmul.f32 -1.442695, %v3313_v18 }
 0x197   :  { %v3170_v10 = vmul.f32 %v1221_v32, %v734_v40  ;;  %v2628_v26 = vpop.eup %2627  ;;  %v1357_v58 = vpack.c.bf16 %v1277_v27, %v1275_v47  ;;  %v1224_v41 = vmul.f32 %v2626_v46, %v2929_v20  ;;  %v2046_v40 = vmul.f32 -1.442695, %v3314_v61 }
 0x198   :  { %v736_v53 = vpop.f32.mrf.mxu1  ;;  %v2630_v1 = vpop.eup %2629  ;;  %v1358_v11 = vpack.c.bf16 %v1278_v35, %v1276_v9  ;;  %v1226_v32 = vmul.f32 %v2628_v26, %v2935_v23  ;;  %v2041_v7 = vmul.f32 -1.442695, %v3315_v14  ;;  %2649 = vpow2.f32 %v2048_v52  ;;  %v3317_v9 = vld [vmem:[#allocation22_spill] sm:$0xff]  ;;  %v3318_v35 = vld [vmem:[#allocation25_spill] sm:$0xff] }
 0x199   :  { %v1361_v60 = vpack.c.bf16 %v3170_v10, %v3168_v37  ;;  %v3181_v13 = vmul.f32 %v1222_v43, %v736_v53  ;;  %v2632_v29 = vpop.eup %2631  ;;  %2651 = vpow2.f32 %v2043_v48 }
 0x19a   :  { %v740_v50 = vpop.f32.mrf.mxu1  ;;  %1591 = vmatprep.mubr.bf16.mxu0 %v1358_v11  ;;  %v2634_v17 = vpop.eup %2633  ;;  %v1042_v6 = vadd.f32 1.0, %v2632_v29  ;;  %2653 = vpow2.f32 %v2046_v40  ;;  %v3320_v29 = vld [vmem:[#allocation26_spill] sm:$0xff] }
 0x19b   :  { %v1362_v49 = vpack.c.bf16 %v3181_v13, %v3177_v39  ;;  %v3196_v15 = vmul.f32 %v1223_v44, %v740_v50  ;;  %1592 = vmatmul.mubr.bf16.gmra.mxu0 %v1357_v58  ;;  %v2636_v43 = vpop.eup %2635  ;;  %v1227_v39 = vmul.f32 %v2630_v1, %v2938_v25  ;;  %v1229_v59 = vmul.f32 %v2634_v17, %v2946_v30  ;;  %v3316_v13 = vld [vmem:[#allocation27_spill] sm:$0xff]  ;;  %v3319_v44 = vld [vmem:[#allocation20_spill] sm:$0xff] }
 0x19c   :  { %v742_v55 = vpop.f32.mrf.mxu1  ;;  %1599 = vmatprep.mubr.bf16.mxu0 %v1360_v2  ;;  %v2638_v12 = vpop.eup %2637  ;;  %v1040_v19 = vadd.f32 1.0, %v2636_v43  ;;  %2655 = vpow2.f32 %v2041_v7  ;;  %v2052_v22 = vmul.f32 -1.442695, %v3316_v13  ;;  %v2047_v25 = vmul.f32 -1.442695, %v3317_v9 }
 0x19d   :  { %v1288_v20 = vmul.f32 %v1224_v41, %v742_v55  ;;  %v2640_v5 = vpop.eup %2639  ;;  %v1228_v2 = vmul.f32 %v2638_v12, %v2943_v28  ;;  %2657 = vrcp.f32 %v1042_v6  ;;  %v2050_v30 = vmul.f32 -1.442695, %v3318_v35 }
 0x19e   :  { %v744_v24 = vpop.f32.mrf.mxu1  ;;  %v1230_v56 = vmul.f32 %v2640_v5, %v2951_v33  ;;  %2659 = vrcp.f32 %v1040_v19  ;;  %v2051_v48 = vmul.f32 -1.442695, %v3320_v29 }
 0x19f   :  { %v3198_v62 = vmul.f32 %v1225_v0, %v744_v24  ;;  %v2642_v46 = vpop.eup %2641  ;;  %v2045_v0 = vmul.f32 -1.442695, %v3319_v44  ;;  %2661 = vpow2.f32 %v2052_v22 }
 0x1a0   :  { %v746_v21 = vpop.f32.mrf.mxu1  ;;  %v2644_v26 = vpop.eup %2643  ;;  %v1046_v58 = vadd.f32 1.0, %v2642_v46  ;;  %2663 = vpow2.f32 %v2047_v25 }
 0x1a1   :  { %v1363_v23 = vpack.c.bf16 %v3198_v62, %v3196_v15  ;;  %v1290_v34 = vmul.f32 %v1226_v32, %v746_v21  ;;  %v2646_v1 = vpop.eup %2645  ;;  %v1041_v3 = vadd.f32 1.0, %v2644_v26  ;;  %2665 = vpow2.f32 %v2050_v30 }
 0x1a2   :  { %v750_v42 = vpop.f32.mrf.mxu1  ;;  %v2648_v52 = vpop.eup %2647  ;;  %2667 = vpow2.f32 %v2045_v0 }
 0x1a3   :  { %v1364_v53 = vpack.c.bf16 %v1290_v34, %v1288_v20  ;;  %v3213_v27 = vmul.f32 %v1227_v39, %v750_v42  ;;  %1600 = vmatmul.mubr.bf16.gmra.mxu0 %v1359_v8  ;;  %v1044_v8 = vadd.f32 1.0, %v2646_v1  ;;  %2669 = vrcp.f32 %v1046_v58  ;;  %v3321_v20 = vld [vmem:[#allocation24_spill] sm:$0xff] }
 0x1a4   :  { %v752_v16 = vpop.f32.mrf.mxu1  ;;  %1607 = vmatprep.mubr.bf16.mxu0 %v1362_v49  ;;  %v1039_v49 = vadd.f32 1.0, %v2648_v52  ;;  %2671 = vrcp.f32 %v1041_v3  ;;  %v2049_v34 = vmul.f32 -1.442695, %v3321_v20 }
 0x1a5   :  { %v1292_v47 = vmul.f32 %v1228_v2, %v752_v16  ;;  %v2650_v32 = vpop.eup %2649  ;;  %2673 = vrcp.f32 %v1044_v8 }
 0x1a6   :  { %v754_v4 = vpop.f32.mrf.mxu1  ;;  %v2652_v17 = vpop.eup %2651  ;;  %2675 = vrcp.f32 %v1039_v49  ;;  %v1050_v42 = vadd.f32 1.0, %v2650_v32 }
 0x1a7   :  { %v3215_v50 = vmul.f32 %v1229_v59, %v754_v4  ;;  %v2654_v40 = vpop.eup %2653  ;;  %v1045_v6 = vadd.f32 1.0, %v2652_v17  ;;  %2677 = vpow2.f32 %v2051_v48 }
 0x1a8   :  { %v756_v28 = vpop.f32.mrf.mxu1  ;;  %v1048_v16 = vadd.f32 1.0, %v2654_v40  ;;  %2679 = vpow2.f32 %v2049_v34 }
 0x1a9   :  { %v1365_v33 = vpack.c.bf16 %v3215_v50, %v3213_v27  ;;  %v1294_v55 = vmul.f32 %v1230_v56, %v756_v28  ;;  %v2656_v7 = vpop.eup %2655  ;;  %2681 = vrcp.f32 %v1050_v42 }
 0x1aa   :  { %v3225_v11 = vpop.f32.mrf.mxu1  ;;  %v2658_v12 = vpop.eup %2657  ;;  %v1043_v37 = vadd.f32 1.0, %v2656_v7  ;;  %2683 = vrcp.f32 %v1045_v6 }
 0x1ab   :  { %v1366_v24 = vpack.c.bf16 %v1294_v55, %v1292_v47  ;;  %1608 = vmatmul.mubr.bf16.gmra.mxu0 %v1361_v60  ;;  %v2660_v39 = vpop.eup %2659  ;;  %v1234_v60 = vmul.f32 %v2658_v12, %v3307_v51  ;;  %2685 = vrcp.f32 %v1048_v16 }
 0x1ac   :  { %v762_v31 = vpop.f32.mrf.mxu1  ;;  %1615 = vmatprep.mubr.bf16.mxu0 %v1364_v53  ;;  %v2662_v53 = vpop.eup %2661  ;;  %v1232_v2 = vmul.f32 %v2660_v39, %v2957_v36  ;;  %2687 = vrcp.f32 %v1043_v37 }
 0x1ad   :  { %v2664_v19 = vpop.eup %2663  ;;  %v1054_v51 = vadd.f32 1.0, %v2662_v53 }
 0x1ae   :  { %v3227_v41 = vpop.f32.mrf.mxu1  ;;  %v2666_v4 = vpop.eup %2665  ;;  %v1296_v25 = vmul.f32 %v1232_v2, %v762_v31  ;;  %v1049_v28 = vadd.f32 1.0, %v2664_v19 }
 0x1af   :  { %v2668_v46 = vpop.eup %2667  ;;  %v1052_v15 = vadd.f32 1.0, %v2666_v4  ;;  %2689 = vrcp.f32 %v1054_v51 }
 0x1b0   :  { %v766_v21 = vpop.f32.mrf.mxu1  ;;  %v2670_v30 = vpop.eup %2669  ;;  %v1047_v55 = vadd.f32 1.0, %v2668_v46  ;;  %2691 = vrcp.f32 %v1049_v28 }
 0x1b1   :  { %v1298_v22 = vmul.f32 %v1234_v60, %v766_v21  ;;  %v2672_v47 = vpop.eup %2671  ;;  %v1238_v0 = vmul.f32 %v2670_v30, %v3308_v54  ;;  %2693 = vrcp.f32 %v1052_v15 }
 0x1b2   :  { %v3234_v43 = vpop.f32.mrf.mxu1  ;;  %v1233_v52 = vmul.f32 %v2672_v47, %v3309_v63  ;;  %2695 = vrcp.f32 %v1047_v55 }
 0x1b3   :  { %1616 = vmatmul.mubr.bf16.gmra.mxu0 %v1363_v23  ;;  %v1368_v62 = vpack.c.bf16 %v1298_v22, %v1296_v25  ;;  %v2674_v23 = vpop.eup %2673 }
 0x1b4   :  { %v772_v5 = vpop.f32.mrf.mxu1  ;;  %1623 = vmatprep.mubr.bf16.mxu0 %v1366_v24  ;;  %v2676_v36 = vpop.eup %2675  ;;  %v1236_v3 = vmul.f32 %v2674_v23, %v3310_v38  ;;  %v1297_v54 = vmul.f32 %v1233_v52, %v3227_v41 }
 0x1b5   :  { %v2678_v24 = vpop.eup %2677  ;;  %v1231_v8 = vmul.f32 %v2676_v36, %v3311_v45 }
 0x1b6   :  { %v3236_v10 = vpop.f32.mrf.mxu1  ;;  %v2680_v32 = vpop.eup %2679  ;;  %v1300_v63 = vmul.f32 %v1236_v3, %v772_v5  ;;  %v1053_v21 = vadd.f32 1.0, %v2678_v24 }
 0x1b7   :  { %v2682_v48 = vpop.eup %2681  ;;  %v1295_v27 = vmul.f32 %v1231_v8, %v3225_v11  ;;  %v1051_v40 = vadd.f32 1.0, %v2680_v32 }
 0x1b8   :  { %v776_v59 = vpop.f32.mrf.mxu1  ;;  %v2684_v50 = vpop.eup %2683  ;;  %v1242_v42 = vmul.f32 %v2682_v48, %v3312_v57  ;;  %2697 = vrcp.f32 %v1053_v21 }
 0x1b9   :  { %v1302_v31 = vmul.f32 %v1238_v0, %v776_v59  ;;  %v2686_v17 = vpop.eup %2685  ;;  %v1367_v38 = vpack.c.bf16 %v1297_v54, %v1295_v27  ;;  %v1237_v45 = vmul.f32 %v2684_v50, %v3313_v18  ;;  %2699 = vrcp.f32 %v1051_v40 }
 0x1ba   :  { %v3243_v56 = vpop.f32.mrf.mxu1  ;;  %v2688_v7 = vpop.eup %2687  ;;  %v1240_v41 = vmul.f32 %v2686_v17, %v3314_v61 }
 0x1bb   :  { %1624 = vmatmul.mubr.bf16.gmra.mxu0 %v1365_v33  ;;  %v1370_v33 = vpack.c.bf16 %v1302_v31, %v1300_v63  ;;  %v1235_v6 = vmul.f32 %v2688_v7, %v3315_v14  ;;  %v1301_v11 = vmul.f32 %v1237_v45, %v3236_v10 }
 0x1bc   :  { %v782_v26 = vpop.f32.mrf.mxu1  ;;  %1631 = vmatprep.mubr.bf16.mxu0 %v1368_v62  ;;  %v2690_v39 = vpop.eup %2689 }
 0x1bd   :  { %v1304_v16 = vmul.f32 %v1240_v41, %v782_v26  ;;  %v1299_v37 = vmul.f32 %v1235_v6, %v3234_v43  ;;  %v2692_v60 = vpop.eup %2691  ;;  %v1246_v61 = vmul.f32 %v2690_v39, %v3316_v13 }
 0x1be   :  { %v784_v1 = vpop.f32.mrf.mxu1  ;;  %v2694_v53 = vpop.eup %2693  ;;  %v1241_v2 = vmul.f32 %v2692_v60, %v3317_v9 }
 0x1bf   :  { %v1369_v18 = vpack.c.bf16 %v1301_v11, %v1299_v37  ;;  %v2696_v19 = vpop.eup %2695  ;;  %v1244_v14 = vmul.f32 %v2694_v53, %v3318_v35 }
 0x1c0   :  { %v786_v58 = vpop.f32.mrf.mxu1  ;;  %v1239_v22 = vmul.f32 %v2696_v19, %v3319_v44  ;;  %v1305_v4 = vmul.f32 %v1241_v2, %v784_v1 }
 0x1c1   :  { %v1306_v12 = vmul.f32 %v1242_v42, %v786_v58 }
 0x1c2   :  { %v790_v49 = vpop.f32.mrf.mxu1  ;;  %v1303_v43 = vmul.f32 %v1239_v22, %v3243_v56 }
 0x1c3   :  { %1632 = vmatmul.mubr.bf16.gmra.mxu0 %v1367_v38  ;;  %v1372_v57 = vpack.c.bf16 %v1306_v12, %v1304_v16 }
 0x1c4   :  { %v792_v34 = vpop.f32.mrf.mxu1  ;;  %1639 = vmatprep.mubr.bf16.mxu0 %v1370_v33  ;;  %v1371_v30 = vpack.c.bf16 %v1305_v4, %v1303_v43 }
 0x1c5   :  { %v1308_v46 = vmul.f32 %v1244_v14, %v792_v34  ;;  %v2698_v51 = vpop.eup %2697 }
 0x1c6   :  { %v794_v5 = vpop.f32.mrf.mxu1  ;;  %v2700_v28 = vpop.eup %2699  ;;  %v1245_v26 = vmul.f32 %v2698_v51, %v3320_v29 }
 0x1c7   :  { %v1243_v13 = vmul.f32 %v2700_v28, %v3321_v20 }
 0x1c8   :  { %v796_v59 = vpop.f32.mrf.mxu1  ;;  %v1309_v9 = vmul.f32 %v1245_v26, %v794_v5 }
 0x1c9   :  { %v1310_v10 = vmul.f32 %v1246_v61, %v796_v59  ;;  %v1307_v35 = vmul.f32 %v1243_v13, %v790_v49 }
 0x1cb   :  { %1640 = vmatmul.mubr.bf16.gmra.mxu0 %v1369_v18  ;;  %v1374_v25 = vpack.c.bf16 %v1310_v10, %v1308_v46  ;;  %v1373_v47 = vpack.c.bf16 %v1309_v9, %v1307_v35 }
 0x1cc   :  { %1647 = vmatprep.mubr.bf16.mxu0 %v1372_v57 }
 0x1d3   :  { %1648 = vmatmul.mubr.bf16.gmra.mxu0 %v1371_v30 }
 0x1d4   :  { %1655 = vmatprep.mubr.bf16.mxu0 %v1374_v25 }
 0x1db   :  { %1656 = vmatmul.mubr.bf16.gmra.mxu0 %v1373_v47 }
 0x216   :  { %v2244_v15 = vpop.f32.mrf.mxu0 }
 0x218   :  { %v2245_v44 = vpop.f32.mrf.mxu0 }
 0x219   :  { %v2246_v55 = vadd.f32 %v2245_v44, %v2244_v15 }
 0x21a   :  { %v2247_v62 = vpop.f32.mrf.mxu0 }
 0x21c   :  { %v2248_v23 = vpop.f32.mrf.mxu0 }
 0x21d   :  { %v2249_v56 = vadd.f32 %v2248_v23, %v2247_v62 }
 0x21e   :  { %v2250_v1 = vpop.f32.mrf.mxu0 }
 0x21f   :  { %v2136_v36 = vpack.c.bf16 %v2249_v56, %v2246_v55 }
 0x220   :  { %v2251_v0 = vpop.f32.mrf.mxu0 }
 0x221   :  { %2137 = vst [vmem:[#allocation9] sm:$0xff] %v2136_v36   ;;  %v2252_v58 = vadd.f32 %v2251_v0, %v2250_v1 }
 0x222   :  { %v2253_v52 = vpop.f32.mrf.mxu0 }
 0x224   :  { %v2254_v29 = vpop.f32.mrf.mxu0 }
 0x225   :  { %v2255_v24 = vadd.f32 %v2254_v29, %v2253_v52 }
 0x226   :  { %v2256_v3 = vpop.f32.mrf.mxu0 }
 0x227   :  { %v2141_v20 = vpack.c.bf16 %v2255_v24, %v2252_v58 }
 0x228   :  { %v2257_v31 = vpop.f32.mrf.mxu0 }
 0x229   :  { %2213 = vst [vmem:[#allocation9 + $0x8] sm:$0xff] %v2141_v20   ;;  %v2258_v49 = vadd.f32 %v2257_v31, %v2256_v3 }
 0x22a   :  { %v2259_v8 = vpop.f32.mrf.mxu0 }
 0x22c   :  { %v2260_v54 = vpop.f32.mrf.mxu0 }
 0x22d   :  { %v2261_v32 = vadd.f32 %v2260_v54, %v2259_v8 }
 0x22e   :  { %v2262_v63 = vpop.f32.mrf.mxu0 }
 0x22f   :  { %v2146_v48 = vpack.c.bf16 %v2261_v32, %v2258_v49 }
 0x230   :  { %v2263_v21 = vpop.f32.mrf.mxu0 }
 0x231   :  { %2214 = vst [vmem:[#allocation9 + $0x10] sm:$0xff] %v2146_v48   ;;  %v2264_v33 = vadd.f32 %v2263_v21, %v2262_v63 }
 0x232   :  { %v2265_v27 = vpop.f32.mrf.mxu0 }
 0x234   :  { %v2266_v50 = vpop.f32.mrf.mxu0 }
 0x235   :  { %v2267_v17 = vadd.f32 %v2266_v50, %v2265_v27 }
 0x236   :  { %v2268_v38 = vpop.f32.mrf.mxu0 }
 0x237   :  { %v2151_v40 = vpack.c.bf16 %v2267_v17, %v2264_v33 }
 0x238   :  { %v2269_v34 = vpop.f32.mrf.mxu0 }
 0x239   :  { %2215 = vst [vmem:[#allocation9 + $0x18] sm:$0xff] %v2151_v40   ;;  %v2270_v45 = vadd.f32 %v2269_v34, %v2268_v38 }
 0x23a   :  { %v2271_v7 = vpop.f32.mrf.mxu0 }
 0x23c   :  { %v2272_v42 = vpop.f32.mrf.mxu0 }
 0x23d   :  { %v2273_v41 = vadd.f32 %v2272_v42, %v2271_v7 }
 0x23e   :  { %v2274_v12 = vpop.f32.mrf.mxu0 }
 0x23f   :  { %v2156_v6 = vpack.c.bf16 %v2273_v41, %v2270_v45 }
 0x240   :  { %v2275_v11 = vpop.f32.mrf.mxu0 }
 0x241   :  { %2216 = vst [vmem:[#allocation9 + $0x20] sm:$0xff] %v2156_v6   ;;  %v2276_v39 = vadd.f32 %v2275_v11, %v2274_v12 }
 0x242   :  { %v2277_v5 = vpop.f32.mrf.mxu0 }
 0x244   :  { %v2278_v16 = vpop.f32.mrf.mxu0 }
 0x245   :  { %v2279_v37 = vadd.f32 %v2278_v16, %v2277_v5 }
 0x247   :  { %v2161_v60 = vpack.c.bf16 %v2279_v37, %v2276_v39 }
 0x249   :  { %2217 = vst [vmem:[#allocation9 + $0x28] sm:$0xff] %v2161_v60  }
 0x253   :  { %v2280_v57 = vpop.f32.mrf.mxu0 }
 0x255   :  { %v2281_v53 = vpop.f32.mrf.mxu0 }
 0x256   :  { %v2282_v19 = vadd.f32 %v2281_v53, %v2280_v57 }
 0x257   :  { %v2283_v18 = vpop.f32.mrf.mxu0 }
 0x259   :  { %v2284_v59 = vpop.f32.mrf.mxu0 }
 0x25a   :  { %v2285_v61 = vadd.f32 %v2284_v59, %v2283_v18 }
 0x25b   :  { %v2286_v2 = vpop.f32.mrf.mxu0 }
 0x25c   :  { %v2166_v14 = vpack.c.bf16 %v2285_v61, %v2282_v19 }
 0x25d   :  { %v2287_v10 = vpop.f32.mrf.mxu0 }
 0x25e   :  { %2218 = vst [vmem:[#allocation9 + $0x30] sm:$0xff] %v2166_v14   ;;  %v2288_v46 = vadd.f32 %v2287_v10, %v2286_v2 }
 0x25f   :  { %v2289_v22 = vpop.f32.mrf.mxu0 }
 0x261   :  { %v2290_v4 = vpop.f32.mrf.mxu0 }
 0x262   :  { %v2291_v43 = vadd.f32 %v2290_v4, %v2289_v22 }
 0x263   :  { %v2292_v51 = vpop.f32.mrf.mxu0 }
 0x264   :  { %v2171_v25 = vpack.c.bf16 %v2291_v43, %v2288_v46 }
 0x265   :  { %v2293_v30 = vpop.f32.mrf.mxu0 }
 0x266   :  { %2219 = vst [vmem:[#allocation9 + $0x38] sm:$0xff] %v2171_v25   ;;  %v2294_v13 = vadd.f32 %v2293_v30, %v2292_v51 }
 0x267   :  { %v2295_v28 = vpop.f32.mrf.mxu0 }
 0x269   :  { %v2296_v26 = vpop.f32.mrf.mxu0 }
 0x26a   :  { %v2297_v9 = vadd.f32 %v2296_v26, %v2295_v28 }
 0x26b   :  { %v2298_v35 = vpop.f32.mrf.mxu0 }
 0x26c   :  { %v2176_v47 = vpack.c.bf16 %v2297_v9, %v2294_v13 }
 0x26d   :  { %v2299_v15 = vpop.f32.mrf.mxu0 }
 0x26e   :  { %2220 = vst [vmem:[#allocation9 + $0x40] sm:$0xff] %v2176_v47   ;;  %v2300_v23 = vadd.f32 %v2299_v15, %v2298_v35 }
 0x26f   :  { %v2301_v44 = vpop.f32.mrf.mxu0 }
 0x271   :  { %v2302_v62 = vpop.f32.mrf.mxu0 }
 0x272   :  { %v2303_v55 = vadd.f32 %v2302_v62, %v2301_v44 }
 0x273   :  { %v2304_v56 = vpop.f32.mrf.mxu0 }
 0x274   :  { %v2181_v1 = vpack.c.bf16 %v2303_v55, %v2300_v23 }
 0x275   :  { %v2305_v36 = vpop.f32.mrf.mxu0 }
 0x276   :  { %2221 = vst [vmem:[#allocation9 + $0x48] sm:$0xff] %v2181_v1   ;;  %v2306_v29 = vadd.f32 %v2305_v36, %v2304_v56 }
 0x277   :  { %v2307_v0 = vpop.f32.mrf.mxu0 }
 0x279   :  { %v2308_v52 = vpop.f32.mrf.mxu0 }
 0x27a   :  { %v2309_v58 = vadd.f32 %v2308_v52, %v2307_v0 }
 0x27b   :  { %v2310_v24 = vpop.f32.mrf.mxu0 }
 0x27c   :  { %v2186_v3 = vpack.c.bf16 %v2309_v58, %v2306_v29 }
 0x27d   :  { %v2311_v20 = vpop.f32.mrf.mxu0 }
 0x27e   :  { %2222 = vst [vmem:[#allocation9 + $0x50] sm:$0xff] %v2186_v3   ;;  %v2312_v54 = vadd.f32 %v2311_v20, %v2310_v24 }
 0x27f   :  { %v2313_v31 = vpop.f32.mrf.mxu0 }
 0x281   :  { %v2314_v8 = vpop.f32.mrf.mxu0 }
 0x282   :  { %v2315_v49 = vadd.f32 %v2314_v8, %v2313_v31 }
 0x283   :  { %v2316_v32 = vpop.f32.mrf.mxu0 }
 0x284   :  { %v2191_v63 = vpack.c.bf16 %v2315_v49, %v2312_v54 }
 0x285   :  { %v2317_v48 = vpop.f32.mrf.mxu0 }
 0x286   :  { %2223 = vst [vmem:[#allocation9 + $0x58] sm:$0xff] %v2191_v63   ;;  %v2318_v50 = vadd.f32 %v2317_v48, %v2316_v32 }
 0x287   :  { %v2319_v21 = vpop.f32.mrf.mxu0 }
 0x289   :  { %v2320_v27 = vpop.f32.mrf.mxu0 }
 0x28a   :  { %v2321_v33 = vadd.f32 %v2320_v27, %v2319_v21 }
 0x28b   :  { %v2322_v17 = vpop.f32.mrf.mxu0 }
 0x28c   :  { %v2196_v40 = vpack.c.bf16 %v2321_v33, %v2318_v50 }
 0x28d   :  { %v2323_v38 = vpop.f32.mrf.mxu0 }
 0x28e   :  { %2224 = vst [vmem:[#allocation9 + $0x60] sm:$0xff] %v2196_v40   ;;  %v2324_v42 = vadd.f32 %v2323_v38, %v2322_v17 }
 0x28f   :  { %v2325_v34 = vpop.f32.mrf.mxu0 }
 0x291   :  { %v2326_v7 = vpop.f32.mrf.mxu0 }
 0x292   :  { %v2327_v45 = vadd.f32 %v2326_v7, %v2325_v34 }
 0x293   :  { %v2328_v41 = vpop.f32.mrf.mxu0 }
 0x294   :  { %v2201_v12 = vpack.c.bf16 %v2327_v45, %v2324_v42 }
 0x295   :  { %v2329_v6 = vpop.f32.mrf.mxu0 }
 0x296   :  { %2225 = vst [vmem:[#allocation9 + $0x68] sm:$0xff] %v2201_v12   ;;  %v2330_v16 = vadd.f32 %v2329_v6, %v2328_v41 }
 0x297   :  { %v2331_v11 = vpop.f32.mrf.mxu0 }
 0x299   :  { %v2332_v5 = vpop.f32.mrf.mxu0 }
 0x29a   :  { %v2333_v39 = vadd.f32 %v2332_v5, %v2331_v11 }
 0x29b   :  { %v2334_v37 = vpop.f32.mrf.mxu0 }
 0x29c   :  { %v2206_v60 = vpack.c.bf16 %v2333_v39, %v2330_v16 }
 0x29d   :  { %v2335_v57 = vpop.f32.mrf.mxu0 }
 0x29e   :  { %2226 = vst [vmem:[#allocation9 + $0x70] sm:$0xff] %v2206_v60   ;;  %v2336_v59 = vadd.f32 %v2335_v57, %v2334_v37 }
 0x29f   :  { %v2337_v53 = vpop.f32.mrf.mxu0 }
 0x2a1   :  { %v2338_v18 = vpop.f32.mrf.mxu0 }
 0x2a2   :  { %v2339_v19 = vadd.f32 %v2338_v18, %v2337_v53 }
 0x2a4   :  { %v2211_v61 = vpack.c.bf16 %v2339_v19, %v2336_v59 }
 0x2a6   :  { %2227 = vst [vmem:[#allocation9 + $0x78] sm:$0xff] %v2211_v61  }
 0x2a7   :  { %2772 = shalt.err (!%p2769_p5)
}
 0x2a8   :  { %1934 = dma.vmem_to_hbm [thread:$0]  %s1929_s2, 2048, %s3276_s3, [#allocation5], %s2791_s22, %s2791_s22, %s2792_s23  }
 0x2a9   :  { %2785 = dma.done.wait [#allocation5], 2048  }
 0x2aa   :  { %2786 = vsyncadd [#allocation5], 4294965248 }
 0x2ab   :  { %1938 = vsyncpa [#allocation4], 1 }
 0x2ac   :  { %1939 = vsyncpa [#allocation7], 1 }
 0x2ad   :  { %1940 = vsyncpa [#allocation5], 1 }

</bundles_post_ra>
